<compile_context>
chip_gen: v7x
topology: tpu7x:2x2x1
jax: 0.10.0
libtpu: 0.0.40
codegen_flags: <defaults>
</compile_context>

<pallas_src>
import functools

import jax
import jax.numpy as jnp
from jax.experimental import pallas as pl
from jax.experimental.pallas import tpu as pltpu


def _round_up(x: int, m: int) -> int:
    return ((x + m - 1) // m) * m


def _heatmap_kernel(sel_ref, kp_ref, out_ref, *, heatmap_size: int, sigma: float):
    """One grid step produces TN heatmaps as a lane-dense (TN, H*H) slab.

    sel_ref: VMEM (2*H, H*H) f32 constant 0/1 selection matrices.
             rows [0, H)   : P[j, l] = 1 iff (l %  H) == j   (x / column gather)
             rows [H, 2*H) : Q[i, l] = 1 iff (l // H) == i   (y / row gather)
             Same block every grid step -> fetched once, stays resident.
    kp_ref : VMEM (TN, 2) f32 normalized keypoints for this block.
    out_ref: VMEM (TN, H*H) heatmaps for this block.
    """
    H = heatmap_size
    TN = kp_ref.shape[0]

    kx = kp_ref[:, 0:1]                                   # (TN, 1)
    ky = kp_ref[:, 1:2]                                   # (TN, 1)
    scale = jnp.float32(H - 1)
    mu_x = kx * scale
    mu_y = ky * scale
    # valid iff BOTH normalized coordinates are strictly > 0 (matches torch;
    # exact 0.0 is treated as invalid by design).
    valid = jnp.logical_and(kx > 0.0, ky > 0.0)           # (TN, 1)

    coords = jax.lax.broadcasted_iota(jnp.int32, (TN, H), 1).astype(jnp.float32)
    neg_inv_two_sigma_sq = jnp.float32(-1.0 / (2.0 * sigma * sigma))

    dx = coords - mu_x                                    # (TN, H), tiny
    dy = coords - mu_y
    gx = jnp.exp(dx * dx * neg_inv_two_sigma_sq)          # (TN, H)  -- tiny EUP work
    gy = jnp.exp(dy * dy * neg_inv_two_sigma_sq)          # (TN, H)
    # Fold the validity mask into the small y-factor (no full-size mask op).
    gy = jnp.where(valid, gy, 0.0)

    # Expand to lane-dense (TN, H*H) with exact 0/1 gather-matmuls on the MXU
    # (otherwise idle); each output column picks exactly one gx / gy entry.
    gx_full = jnp.dot(gx, sel_ref[0:H, :], preferred_element_type=jnp.float32)
    gy_full = jnp.dot(gy, sel_ref[H:2 * H, :], preferred_element_type=jnp.float32)

    # Separable Gaussian: exp(-(dx^2+dy^2)/(2s^2)) == exp(a) * exp(b).
    out_ref[...] = (gx_full * gy_full).astype(out_ref.dtype)


def gaussian_heatmap_generator(keypoints_2d: jax.Array,
                               heatmap_size: int = 64,
                               sigma: float = 2.0,
                               block_n: int = 128,
                               out_dtype=jnp.float32) -> jax.Array:
    """Pallas equivalent of GaussianHeatmapGenerator.forward.

    Args:
        keypoints_2d: [B, J, 2] float32 normalized coordinates (0-1).
        out_dtype: jnp.float32 (default, exact) or jnp.bfloat16 if the
            consumer tolerates ~3-digit outputs (halves HBM writeback).
    Returns:
        heatmaps: [B, J, heatmap_size, heatmap_size] of `out_dtype`.
    """
    B, J, two = keypoints_2d.shape
    assert two == 2
    H = heatmap_size
    HH = H * H
    N = B * J

    kp_flat = keypoints_2d.reshape(N, 2).astype(jnp.float32)

    # Block size over the flattened (B*J) heatmap axis.  Pick TN as a divisor
    # of round_up(N, 8) so padding never exceeds 7 rows and, for N % 8 == 0,
    # the post-call slice copy is avoided entirely.  Cap TN at 256 (safe VMEM
    # envelope on v7x); raise block_n toward 256 on v5e/v6e only for large
    # batches with many grid steps.
    n8 = _round_up(N, 8)
    tn_cap = min(max(block_n, 8), 256, n8)
    TN = 8
    for cand in range(tn_cap - tn_cap % 8, 0, -8):
        if n8 % cand == 0:
            TN = cand
            break
    N_pad = n8
    if N_pad != N:
        # Padded rows are (0, 0) => invalid => all-zero heatmaps, sliced off.
        kp_flat = jnp.pad(kp_flat, ((0, N_pad - N), (0, 0)))

    # Constant 0/1 selection matrices replacing the module's x_grid / y_grid
    # buffers: column gather (x) and row gather (y) over the flattened H*H
    # lane axis.  2*H*HH*4 bytes (2 MiB at H=64), DMA'd once, stays resident.
    l = jnp.arange(HH, dtype=jnp.int32)[None, :]
    j = jnp.arange(H, dtype=jnp.int32)[:, None]
    sel_x = (l % H == j).astype(jnp.float32)              # (H, HH)
    sel_y = (l // H == j).astype(jnp.float32)             # (H, HH)
    sel = jnp.concatenate([sel_x, sel_y], axis=0)         # (2H, HH)

    kernel = functools.partial(
        _heatmap_kernel, heatmap_size=H, sigma=float(sigma))

    grid_len = N_pad // TN
    # TODO(synk): for tiny configs (grid_len == 1, e.g. B*J == 8) the call is
    # pure launch/step overhead and cannot shard across v7x's 2 TensorCores;
    # fusing heatmap generation into the consumer is the only meaningful win.

    cost = pl.CostEstimate(
        flops=int(2 * 2 * N_pad * H * HH + N_pad * HH + 8 * N_pad * H),
        transcendentals=int(2 * N_pad * H),
        bytes_accessed=int(N_pad * HH * jnp.dtype(out_dtype).itemsize
                           + sel.size * 4 + kp_flat.size * 4),
    )

    out_flat = pl.pallas_call(
        kernel,
        out_shape=jax.ShapeDtypeStruct((N_pad, HH), out_dtype),
        grid=(grid_len,),
        in_specs=[
            # Constant selection matrices: same block every step (resident).
            pl.BlockSpec((2 * H, HH), lambda i: (0, 0)),
            # Keypoints for this block, in VMEM (not SMEM).
            pl.BlockSpec((TN, 2), lambda i: (i, 0)),
        ],
        # Lane-dense output slab: last dim H*H -> unmasked full-vreg stores
        # and padding-free output DMA.
        out_specs=pl.BlockSpec((TN, HH), lambda i: (i, 0)),
        compiler_params=pltpu.CompilerParams(
            dimension_semantics=("parallel",),
            vmem_limit_bytes=32 * 1024 * 1024,
        ),
        cost_estimate=cost,
    )(sel, kp_flat)

    # Only slice when padding rows exist (slice would materialize a copy);
    # reshape alone is metadata-only.
    heatmaps = out_flat if N_pad == N else out_flat[:N]
    return heatmaps.reshape(B, J, H, H)


def _reference(keypoints_2d, heatmap_size=64, sigma=2.0):
    """Pure-JAX reference matching the PyTorch forward exactly."""
    coords = jnp.arange(heatmap_size, dtype=jnp.float32)
    y_grid, x_grid = jnp.meshgrid(coords, coords, indexing="ij")
    kp_scaled = keypoints_2d * (heatmap_size - 1)
    mu_x = kp_scaled[..., 0][..., None, None]
    mu_y = kp_scaled[..., 1][..., None, None]
    dist_sq = (x_grid - mu_x) ** 2 + (y_grid - mu_y) ** 2
    heatmaps = jnp.exp(-dist_sq / (2.0 * sigma ** 2))
    valid = jnp.all(keypoints_2d > 0, axis=-1)
    return heatmaps * valid[..., None, None].astype(heatmaps.dtype)


if __name__ == "__main__":
    # Module configuration: num_joints=4, heatmap_size=64, sigma=2.0.
    B, J, HS, SIGMA = 2, 4, 64, 2.0

    key = jax.random.PRNGKey(0)
    # Mostly in (0,1); shift a few below zero to exercise the validity mask.
    keypoints = jax.random.uniform(key, (B, J, 2), dtype=jnp.float32) - 0.1

    out = gaussian_heatmap_generator(keypoints, heatmap_size=HS, sigma=SIGMA)
    out = jax.block_until_ready(out)

    ref = _reference(keypoints, heatmap_size=HS, sigma=SIGMA)
    assert out.shape == (B, J, HS, HS), out.shape
    assert jnp.allclose(out, ref, atol=1e-5, rtol=1e-5), (
        float(jnp.max(jnp.abs(out - ref))))

    print("KERNEL_OK")
</pallas_src>

<mosaic_0001>
module attributes {stable_mosaic.version = 11 : i64} {
  func.func @_heatmap_kernel(%arg0: i32, %arg1: memref<128x4096xf32, #tpu.memory_space<vmem>>, %arg2: memref<8x2xf32, #tpu.memory_space<vmem>>, %arg3: memref<8x4096xf32, #tpu.memory_space<vmem>>) attributes {dimension_semantics = [#tpu.dimension_semantics<parallel>], iteration_bounds = array<i64: 1>, scalar_prefetch = 0 : i64, scratch_operands = 0 : i64, tpu.core_type = #tpu.core_type<tc>, window_params = [{pipeline_mode = #tpu.pipeline_mode<synchronous>, transform_indices = @transform_0, window_bounds = array<i64: 128, 4096>}, {transform_indices = @transform_1, window_bounds = array<i64: 8, 2>}, {transform_indices = @transform_2, window_bounds = array<i64: 8, 4096>}]} {
    %c0 = arith.constant 0 : index
    %c0_0 = arith.constant 0 : index
    %0 = vector.load %arg2[%c0, %c0_0] : memref<8x2xf32, #tpu.memory_space<vmem>>, vector<8x1xf32>
    %c0_1 = arith.constant 0 : index
    %c1 = arith.constant 1 : index
    %1 = vector.load %arg2[%c0_1, %c1] : memref<8x2xf32, #tpu.memory_space<vmem>>, vector<8x1xf32>
    %cst = arith.constant 6.300000e+01 : f32
    %2 = vector.broadcast %cst : f32 to vector<8x1xf32>
    %3 = arith.mulf %0, %2 : vector<8x1xf32>
    %cst_2 = arith.constant 6.300000e+01 : f32
    %4 = vector.broadcast %cst_2 : f32 to vector<8x1xf32>
    %5 = arith.mulf %1, %4 : vector<8x1xf32>
    %cst_3 = arith.constant 0.000000e+00 : f32
    %6 = vector.broadcast %cst_3 : f32 to vector<8x1xf32>
    %7 = arith.cmpf ogt, %0, %6 : vector<8x1xf32>
    %cst_4 = arith.constant 0.000000e+00 : f32
    %8 = vector.broadcast %cst_4 : f32 to vector<8x1xf32>
    %9 = arith.cmpf ogt, %1, %8 : vector<8x1xf32>
    %10 = arith.andi %7, %9 : vector<8x1xi1>
    %11 = tpu.iota {dimensions = array<i32: 1>} : vector<8x64xi32>
    %12 = arith.sitofp %11 : vector<8x64xi32> to vector<8x64xf32>
    %13 = vector.broadcast %3 : vector<8x1xf32> to vector<8x64xf32>
    %14 = arith.subf %12, %13 : vector<8x64xf32>
    %15 = vector.broadcast %5 : vector<8x1xf32> to vector<8x64xf32>
    %16 = arith.subf %12, %15 : vector<8x64xf32>
    %17 = arith.mulf %14, %14 : vector<8x64xf32>
    %cst_5 = arith.constant -1.250000e-01 : f32
    %18 = vector.broadcast %cst_5 : f32 to vector<8x64xf32>
    %19 = arith.mulf %17, %18 : vector<8x64xf32>
    %20 = math.exp %19 : vector<8x64xf32>
    %21 = arith.mulf %16, %16 : vector<8x64xf32>
    %cst_6 = arith.constant -1.250000e-01 : f32
    %22 = vector.broadcast %cst_6 : f32 to vector<8x64xf32>
    %23 = arith.mulf %21, %22 : vector<8x64xf32>
    %24 = math.exp %23 : vector<8x64xf32>
    %cst_7 = arith.constant 0.000000e+00 : f32
    %25 = vector.shape_cast %10 : vector<8x1xi1> to vector<8x1xi1>
    %26 = vector.broadcast %25 : vector<8x1xi1> to vector<8x64xi1>
    %27 = vector.broadcast %cst_7 : f32 to vector<8x64xf32>
    %28 = arith.select %26, %24, %27 : vector<8x64xi1>, vector<8x64xf32>
    %c0_8 = arith.constant 0 : index
    %c0_9 = arith.constant 0 : index
    %29 = vector.load %arg1[%c0_8, %c0_9] : memref<128x4096xf32, #tpu.memory_space<vmem>>, vector<64x4096xf32>
    %cst_10 = arith.constant dense<0.000000e+00> : vector<8x4096xf32>
    %30 = tpu.matmul %20, %29, %cst_10 {dimension_numbers = #tpu.dot_dimension_numbers<[1], [0], [0], [1], [0, 0, 1, 1], [], []>} : vector<8x64xf32>, vector<64x4096xf32>, vector<8x4096xf32> -> vector<8x4096xf32>
    %c64 = arith.constant 64 : index
    %c0_11 = arith.constant 0 : index
    %31 = vector.load %arg1[%c64, %c0_11] : memref<128x4096xf32, #tpu.memory_space<vmem>>, vector<64x4096xf32>
    %cst_12 = arith.constant dense<0.000000e+00> : vector<8x4096xf32>
    %32 = tpu.matmul %28, %31, %cst_12 {dimension_numbers = #tpu.dot_dimension_numbers<[1], [0], [0], [1], [0, 0, 1, 1], [], []>} : vector<8x64xf32>, vector<64x4096xf32>, vector<8x4096xf32> -> vector<8x4096xf32>
    %33 = arith.mulf %30, %32 : vector<8x4096xf32>
    %c0_13 = arith.constant 0 : index
    %c0_14 = arith.constant 0 : index
    %34 = vector.load %arg3[%c0_13, %c0_14] : memref<8x4096xf32, #tpu.memory_space<vmem>>, vector<8x4096xf32>
    tpu.vector_store %arg3[%c0_13, %c0_14], %33 {strides = array<i32>} : memref<8x4096xf32, #tpu.memory_space<vmem>>, vector<8x4096xf32>,
    return
  }
  func.func @transform_0(%arg0: i32) -> (i32, i32) {
    %c0_i32 = arith.constant 0 : i32
    %c0_i32_0 = arith.constant 0 : i32
    %c0_i32_1 = arith.constant 0 : i32
    return %c0_i32, %c0_i32_0 : i32, i32
  }
  func.func @transform_1(%arg0: i32) -> (i32, i32) {
    %c0_i32 = arith.constant 0 : i32
    %c0_i32_0 = arith.constant 0 : i32
    return %arg0, %c0_i32 : i32, i32
  }
  func.func @transform_2(%arg0: i32) -> (i32, i32) {
    %c0_i32 = arith.constant 0 : i32
    %c0_i32_0 = arith.constant 0 : i32
    return %arg0, %c0_i32 : i32, i32
  }
}

</mosaic_0001>

<bundles_post_ra>
// kernel: tpu_custom_call.1
= control target key start
LH: loop header
LB: loop body
LE: loop exit
PB: predicated region body
PF: predicated region fallthrough
CT: control target
= control target key end

     0   :  { %7 = vsyncpa [#allocation3], 0  ;;  %s3780_s0 = inlined_call_operand.hbm [shape: f32[128,4096], index: 0, kind: input, shape index: {}]   ;;  %s3781_s1 = inlined_call_operand.vmem [shape: f32[8,2], index: 1, kind: input, shape index: {}]   ;;  %s3782_s2 = inlined_call_operand.hbm [shape: f32[8,4096], index: 2, kind: output, shape index: {}]  }
   0x1   :  { %8 = vsyncpa [#allocation4], 0  ;;  %s3539_s9 = smov [#allocation2]   ;;  %s3491_s13 = scalar_lea.hbm %s3780_s0, 65536 }
   0x2   :  { %s14_s10 = sshll.u32 %s3539_s9, 4  ;;  %p3492_p0 = scmp.ne.s32.totalorder %s3780_s0, %s3491_s13  ;;  %s15_s10 = int_to_ptr.vmem [resolvable:$true] %s14_s10 }
   0x3   :  { %p3495_p1 = scmp.lt.u32.totalorder %s3491_s13, %s3780_s0 }
   0x5   :  { %p3497_p2 = pnand %p3495_p1, %p3492_p0 }
   0x7   :  { %3500 = shalt.err (!%p3497_p2)
}
   0x8   :  { %s3501_s18 = scalar_lea.vmem %s15_s10, 65536  ;;  %p3506_p4 = scmp.lt.s32.totalorder %s15_s10, %s15_s10 }
   0x9   :  { %p3502_p3 = scmp.ne.s32.totalorder %s15_s10, %s3501_s18  ;;  %p3507_p5 = scmp.lt.s32.totalorder %s3501_s18, %s3501_s18 }
   0xb   :  { %p3508_p6 = por %p3507_p5, %p3506_p4 }
   0xd   :  { %p3509_p7 = pnand %p3508_p6, %p3502_p3 }
   0xf   :  { %3512 = shalt.err (!%p3509_p7)
}
  0x10   :  { %s3540_s19 = smov 4096   ;;  %s3541_s20 = smov 256  }
  0x11   :  { %20 = dma.hbm_to_vmem [thread:$0]  %s3780_s0, 65536, %s15_s10, [#allocation3], %s3540_s19, %s3540_s19, %s3541_s20  }
  0x12   :  { %3535 = dma.done.wait [#allocation3], 65536  }
  0x13   :  { %3536 = vsyncadd [#allocation3], 4294901760  ;;  %v3542_v0 = vmov 0   ;;  %v3543_v1 = vmov 1   ;;  %v3578_v2 = vld [vmem:[%s3781_s1] sm:$0xff]  ;;  %v63_v4 = vld [vmem:[#allocation2 + $0x8] sm:$0xff]  ;;  %v34_v60 = vlaneseq }
  0x14   :  { %3484 = vset.pattern.permute.xlu0 %v3542_v0  ;;  %3485 = vset.pattern.permute.xlu1 %v3543_v1  ;;  %v27_v3 = vmul.f32 63.0, %v3578_v2  ;;  %vm28_vm0 = vcmp.gt.f32.partialorder %v3578_v2, 0.0  ;;  %v95_v5 = vld [vmem:[#allocation2 + $0x108] sm:$0xff]  ;;  %v65_v6 = vld [vmem:[#allocation2 + $0x18] sm:$0xff]  ;;  %v62_v9 = vld [vmem:[#allocation2] sm:$0xff]  ;;  %s3544_s0 = smov 127  }
  0x15   :  { %v2964_v7 = vpack.c.bf16 %v95_v5, %v63_v4  ;;  %v97_v8 = vld [vmem:[#allocation2 + $0x118] sm:$0xff]  ;;  %v94_v10 = vld [vmem:[#allocation2 + $0x100] sm:$0xff]  ;;  %v29_v11 = vsel %vm28_vm0, 1, %v3542_v0  ;;  %v64_v14 = vld [vmem:[#allocation2 + $0x10] sm:$0xff]  ;;  %v3545_v41 = vmov 0.0   ;;  %v3588_v61 = vand.u32 127, %v34_v60 }
  0x16   :  { %39 = vperm.xlu0 %3484, %v27_v3   ;;  %44 = vperm.xlu1 %3485, %v27_v3   ;;  %v2980_v12 = vpack.c.bf16 %v97_v8, %v65_v6  ;;  %v2966_v13 = vpack.c.bf16 %v94_v10, %v62_v9  ;;  %v96_v15 = vld [vmem:[#allocation2 + $0x110] sm:$0xff]  ;;  %v127_v17 = vld [vmem:[#allocation2 + $0x208] sm:$0xff]  ;;  %v129_v19 = vld [vmem:[#allocation2 + $0x218] sm:$0xff]  ;;  %vm318_vm3 = vcmask 523264   ;;  %s3546_s1 = smov [#allocation5]  }
  0x17   :  { %2965 = vmatprep.subr.bf16.mxu0 %v2964_v7  ;;  %v2982_v16 = vpack.c.bf16 %v96_v15, %v64_v14  ;;  %v159_v18 = vld [vmem:[#allocation2 + $0x308] sm:$0xff]  ;;  %v161_v21 = vld [vmem:[#allocation2 + $0x318] sm:$0xff]  ;;  %v126_v22 = vld [vmem:[#allocation2 + $0x200] sm:$0xff]  ;;  %386 = vmatprep.mubr.f32.mxu0 %v3545_v41  ;;  %v36_v62 = vcvt.s32.f32 %v3588_v61  ;;  %s2923_s25 = sshll.u32 %s3546_s1, 4  ;;  %s2924_s25 = int_to_ptr.vmem [resolvable:$true] %s2923_s25 }
  0x18   :  { %2981 = vmatprep.subr.bf16.mxu1 %v2980_v12  ;;  %2967 = vmatpush1.bf16.msra.mxu0 %v2966_v13  ;;  %v2968_v20 = vpack.c.bf16 %v159_v18, %v127_v17  ;;  %v158_v23 = vld [vmem:[#allocation2 + $0x300] sm:$0xff]  ;;  %v2984_v24 = vpack.c.bf16 %v161_v21, %v129_v19  ;;  %v128_v26 = vld [vmem:[#allocation2 + $0x210] sm:$0xff]  ;;  %v191_v29 = vld [vmem:[#allocation2 + $0x408] sm:$0xff]  ;;  %s3513_s26 = scalar_lea.vmem %s2924_s25, 4096  ;;  %p3518_p9 = scmp.lt.s32.totalorder %s2924_s25, %s2924_s25 }
  0x19   :  { %2983 = vmatpush1.bf16.msra.mxu1 %v2982_v16  ;;  %v2970_v25 = vpack.c.bf16 %v158_v23, %v126_v22  ;;  %v160_v27 = vld [vmem:[#allocation2 + $0x310] sm:$0xff]  ;;  %v223_v30 = vld [vmem:[#allocation2 + $0x508] sm:$0xff]  ;;  %v193_v31 = vld [vmem:[#allocation2 + $0x418] sm:$0xff]  ;;  %457 = vmatprep.mubr.f32.mxu1 %v3545_v41  ;;  %p3514_p8 = scmp.ne.s32.totalorder %s2924_s25, %s3513_s26  ;;  %p3519_p10 = scmp.lt.s32.totalorder %s3513_s26, %s3513_s26 }
  0x1a   :  { %30 = vrot.lane.b32.xlu0 %v29_v11, %s3544_s0  ;;  %3486 = vset.pattern.permute.xlu1 %v3542_v0  ;;  %v2986_v28 = vpack.c.bf16 %v160_v27, %v128_v26  ;;  %v2972_v32 = vpack.c.bf16 %v223_v30, %v191_v29  ;;  %v225_v33 = vld [vmem:[#allocation2 + $0x518] sm:$0xff]  ;;  %v190_v34 = vld [vmem:[#allocation2 + $0x400] sm:$0xff]  ;;  %v192_v38 = vld [vmem:[#allocation2 + $0x410] sm:$0xff] }
  0x1b   :  { %2969 = vmatprep.subr.bf16.mxu0 %v2968_v20  ;;  %2985 = vmatprep.subr.bf16.mxu1 %v2984_v24  ;;  %v222_v35 = vld [vmem:[#allocation2 + $0x500] sm:$0xff]  ;;  %v2988_v36 = vpack.c.bf16 %v225_v33, %v193_v31  ;;  %v224_v39 = vld [vmem:[#allocation2 + $0x510] sm:$0xff]  ;;  %v255_v40 = vld [vmem:[#allocation2 + $0x608] sm:$0xff]  ;;  %p3520_p11 = por %p3519_p10, %p3518_p9 }
  0x1c   :  { %2971 = vmatpush1.bf16.msra.mxu0 %v2970_v25  ;;  %v2974_v37 = vpack.c.bf16 %v222_v35, %v190_v34  ;;  %v2990_v42 = vpack.c.bf16 %v224_v39, %v192_v38  ;;  %v287_v43 = vld [vmem:[#allocation2 + $0x708] sm:$0xff]  ;;  %v257_v44 = vld [vmem:[#allocation2 + $0x618] sm:$0xff]  ;;  %v254_v48 = vld [vmem:[#allocation2 + $0x600] sm:$0xff] }
  0x1d   :  { %2987 = vmatpush1.bf16.msra.mxu1 %v2986_v28  ;;  %2973 = vmatprep.subr.bf16.mxu0 %v2972_v32  ;;  %v289_v45 = vld [vmem:[#allocation2 + $0x718] sm:$0xff]  ;;  %v2976_v46 = vpack.c.bf16 %v287_v43, %v255_v40  ;;  %v286_v49 = vld [vmem:[#allocation2 + $0x700] sm:$0xff]  ;;  %v256_v50 = vld [vmem:[#allocation2 + $0x610] sm:$0xff]  ;;  %p3521_p12 = pnand %p3520_p11, %p3514_p8 }
  0x1e   :  { %2989 = vmatprep.subr.bf16.mxu1 %v2988_v36  ;;  %v2992_v47 = vpack.c.bf16 %v289_v45, %v257_v44  ;;  %v2978_v51 = vpack.c.bf16 %v286_v49, %v254_v48  ;;  %v288_v52 = vld [vmem:[#allocation2 + $0x710] sm:$0xff]  ;;  %v67_v53 = vld [vmem:[#allocation2 + $0x28] sm:$0xff]  ;;  %v69_v57 = vld [vmem:[#allocation2 + $0x38] sm:$0xff] }
  0x1f   :  { %v99_v54 = vld [vmem:[#allocation2 + $0x128] sm:$0xff]  ;;  %v2994_v55 = vpack.c.bf16 %v288_v52, %v256_v50  ;;  %v101_v58 = vld [vmem:[#allocation2 + $0x138] sm:$0xff]  ;;  %v66_v8 = vld [vmem:[#allocation2 + $0x20] sm:$0xff] }
  0x20   :  { %2975 = vmatpush1.bf16.msra.mxu0 %v2974_v37  ;;  %v2996_v56 = vpack.c.bf16 %v99_v54, %v67_v53  ;;  %v3012_v59 = vpack.c.bf16 %v101_v58, %v69_v57  ;;  %v98_v9 = vld [vmem:[#allocation2 + $0x120] sm:$0xff]  ;;  %v68_v10 = vld [vmem:[#allocation2 + $0x30] sm:$0xff]  ;;  %v131_v12 = vld [vmem:[#allocation2 + $0x228] sm:$0xff] }
  0x21   :  { %2991 = vmatpush1.bf16.msra.mxu1 %v2990_v42  ;;  %2977 = vmatprep.subr.bf16.mxu0 %v2976_v46  ;;  %v100_v11 = vld [vmem:[#allocation2 + $0x130] sm:$0xff]  ;;  %v163_v13 = vld [vmem:[#allocation2 + $0x328] sm:$0xff]  ;;  %v133_v14 = vld [vmem:[#allocation2 + $0x238] sm:$0xff]  ;;  %v2998_v16 = vpack.c.bf16 %v98_v9, %v66_v8 }
  0x22   :  { %2993 = vmatprep.subr.bf16.mxu1 %v2992_v47  ;;  %v165_v15 = vld [vmem:[#allocation2 + $0x338] sm:$0xff]  ;;  %v3014_v17 = vpack.c.bf16 %v100_v11, %v68_v10  ;;  %v130_v18 = vld [vmem:[#allocation2 + $0x220] sm:$0xff]  ;;  %v3000_v2 = vpack.c.bf16 %v163_v13, %v131_v12  ;;  %v132_v21 = vld [vmem:[#allocation2 + $0x230] sm:$0xff] }
  0x23   :  { %v162_v19 = vld [vmem:[#allocation2 + $0x320] sm:$0xff]  ;;  %v3016_v20 = vpack.c.bf16 %v165_v15, %v133_v14  ;;  %v164_v22 = vld [vmem:[#allocation2 + $0x330] sm:$0xff]  ;;  %v227_v24 = vld [vmem:[#allocation2 + $0x528] sm:$0xff] }
  0x24   :  { %2979 = vmatpush1.bf16.msra.mxu0 %v2978_v51  ;;  %v197_v25 = vld [vmem:[#allocation2 + $0x438] sm:$0xff]  ;;  %v3002_v27 = vpack.c.bf16 %v162_v19, %v130_v18  ;;  %v3018_v28 = vpack.c.bf16 %v164_v22, %v132_v21  ;;  %v194_v29 = vld [vmem:[#allocation2 + $0x420] sm:$0xff]  ;;  %v196_v33 = vld [vmem:[#allocation2 + $0x430] sm:$0xff] }
  0x25   :  { %2995 = vmatpush1.bf16.msra.mxu1 %v2994_v55  ;;  %2997 = vmatprep.subr.bf16.mxu0 %v2996_v56  ;;  %v229_v26 = vld [vmem:[#allocation2 + $0x538] sm:$0xff]  ;;  %v226_v30 = vld [vmem:[#allocation2 + $0x520] sm:$0xff]  ;;  %v228_v34 = vld [vmem:[#allocation2 + $0x530] sm:$0xff] }
  0x26   :  { %3013 = vmatprep.subr.bf16.mxu1 %v3012_v59  ;;  %v3020_v32 = vpack.c.bf16 %v229_v26, %v197_v25  ;;  %v259_v35 = vld [vmem:[#allocation2 + $0x628] sm:$0xff]  ;;  %v261_v37 = vld [vmem:[#allocation2 + $0x638] sm:$0xff]  ;;  %v3006_v39 = vpack.c.bf16 %v226_v30, %v194_v29  ;;  %v3022_v40 = vpack.c.bf16 %v228_v34, %v196_v33  ;;  %v258_v42 = vld [vmem:[#allocation2 + $0x620] sm:$0xff] }
  0x27   :  { %v291_v36 = vld [vmem:[#allocation2 + $0x728] sm:$0xff]  ;;  %v293_v38 = vld [vmem:[#allocation2 + $0x738] sm:$0xff]  ;;  %v290_v43 = vld [vmem:[#allocation2 + $0x720] sm:$0xff] }
  0x28   :  { %v3008_v44 = vpack.c.bf16 %v291_v36, %v259_v35  ;;  %v3024_v45 = vpack.c.bf16 %v293_v38, %v261_v37  ;;  %v260_v46 = vld [vmem:[#allocation2 + $0x630] sm:$0xff]  ;;  %v71_v48 = vld [vmem:[#allocation2 + $0x48] sm:$0xff]  ;;  %v73_v50 = vld [vmem:[#allocation2 + $0x58] sm:$0xff]  ;;  %v3010_v52 = vpack.c.bf16 %v290_v43, %v258_v42 }
  0x29   :  { %v292_v47 = vld [vmem:[#allocation2 + $0x730] sm:$0xff]  ;;  %v103_v49 = vld [vmem:[#allocation2 + $0x148] sm:$0xff]  ;;  %v105_v51 = vld [vmem:[#allocation2 + $0x158] sm:$0xff] }
  0x2a   :  { %v3026_v53 = vpack.c.bf16 %v292_v47, %v260_v46  ;;  %v70_v54 = vld [vmem:[#allocation2 + $0x40] sm:$0xff]  ;;  %v3028_v56 = vpack.c.bf16 %v103_v49, %v71_v48  ;;  %v3044_v57 = vpack.c.bf16 %v105_v51, %v73_v50  ;;  %v72_v58 = vld [vmem:[#allocation2 + $0x50] sm:$0xff]  ;;  %v135_v60 = vld [vmem:[#allocation2 + $0x248] sm:$0xff] }
  0x2b   :  { %v102_v55 = vld [vmem:[#allocation2 + $0x140] sm:$0xff]  ;;  %v104_v59 = vld [vmem:[#allocation2 + $0x150] sm:$0xff]  ;;  %v199_v12 = vld [vmem:[#allocation2 + $0x448] sm:$0xff] }
  0x2c   :  { %v136_v10 = vld [vmem:[#allocation2 + $0x250] sm:$0xff]  ;;  %v231_v13 = vld [vmem:[#allocation2 + $0x548] sm:$0xff]  ;;  %v201_v14 = vld [vmem:[#allocation2 + $0x458] sm:$0xff] }
  0x2d   :  { %v168_v11 = vld [vmem:[#allocation2 + $0x350] sm:$0xff]  ;;  %v233_v15 = vld [vmem:[#allocation2 + $0x558] sm:$0xff]  ;;  %v198_v18 = vld [vmem:[#allocation2 + $0x440] sm:$0xff] }
  0x2e   :  { %v230_v19 = vld [vmem:[#allocation2 + $0x540] sm:$0xff]  ;;  %v200_v21 = vld [vmem:[#allocation2 + $0x450] sm:$0xff]  ;;  %v265_v25 = vld [vmem:[#allocation2 + $0x658] sm:$0xff] }
  0x2f   :  { %v232_v22 = vld [vmem:[#allocation2 + $0x550] sm:$0xff]  ;;  %v297_v26 = vld [vmem:[#allocation2 + $0x758] sm:$0xff]  ;;  %v262_v29 = vld [vmem:[#allocation2 + $0x640] sm:$0xff] }
  0x30   :  { %v294_v30 = vld [vmem:[#allocation2 + $0x740] sm:$0xff]  ;;  %v264_v33 = vld [vmem:[#allocation2 + $0x650] sm:$0xff]  ;;  %v75_v35 = vld [vmem:[#allocation2 + $0x68] sm:$0xff] }
  0x31   :  { %v296_v34 = vld [vmem:[#allocation2 + $0x750] sm:$0xff]  ;;  %v107_v36 = vld [vmem:[#allocation2 + $0x168] sm:$0xff]  ;;  %v77_v37 = vld [vmem:[#allocation2 + $0x78] sm:$0xff] }
  0x32   :  { %v109_v38 = vld [vmem:[#allocation2 + $0x178] sm:$0xff]  ;;  %v74_v42 = vld [vmem:[#allocation2 + $0x60] sm:$0xff]  ;;  %v76_v46 = vld [vmem:[#allocation2 + $0x70] sm:$0xff] }
  0x33   :  { %v106_v43 = vld [vmem:[#allocation2 + $0x160] sm:$0xff]  ;;  %v108_v47 = vld [vmem:[#allocation2 + $0x170] sm:$0xff]  ;;  %v139_v48 = vld [vmem:[#allocation2 + $0x268] sm:$0xff] }
  0x34   :  { %v171_v49 = vld [vmem:[#allocation2 + $0x368] sm:$0xff]  ;;  %v141_v50 = vld [vmem:[#allocation2 + $0x278] sm:$0xff] }
  0x35   :  { %v173_v51 = vld [vmem:[#allocation2 + $0x378] sm:$0xff] }
  0x95   :  { %v40_v63 = vpop.permute.xlu0 %39 }
  0x96   :  { %v42_v1 = vsub.f32 %v36_v62, %v40_v63  ;;  %v167_v63 = vld [vmem:[#allocation2 + $0x348] sm:$0xff] }
  0x97   :  { %v3032_v8 = vpack.c.bf16 %v167_v63, %v135_v60  ;;  %v203_v60 = vld [vmem:[#allocation2 + $0x468] sm:$0xff] }
  0x98   :  { %v48_v3 = vmul.f32 %v42_v1, %v42_v1  ;;  %v137_v1 = vld [vmem:[#allocation2 + $0x258] sm:$0xff]  ;;  %v235_v63 = vld [vmem:[#allocation2 + $0x568] sm:$0xff] }
  0x99   :  { %v31_v4 = vpop.permute.xlu0 %30 }
  0x9a   :  { %v49_v5 = vmul.f32 -0.125, %v48_v3  ;;  %vm32_vm1 = vcmp.ne.s32.totalorder %v31_v4, 0  ;;  %v169_v3 = vld [vmem:[#allocation2 + $0x358] sm:$0xff]  ;;  %v3030_v4 = vpack.c.bf16 %v102_v55, %v70_v54  ;;  %v138_v54 = vld [vmem:[#allocation2 + $0x260] sm:$0xff] }
  0x9b   :  { %vm33_vm2 = vmand %vm28_vm0, %vm32_vm1  ;;  %v3048_v9 = vpack.c.bf16 %v169_v3, %v137_v1  ;;  %v170_v55 = vld [vmem:[#allocation2 + $0x360] sm:$0xff]  ;;  %v205_v1 = vld [vmem:[#allocation2 + $0x478] sm:$0xff] }
  0x9c   :  { %v50_v6 = vmul.f32 1.442695, %v49_v5  ;;  %v56_v7 = vsel %vm33_vm2, 1, %v3542_v0  ;;  %v195_v0 = vld [vmem:[#allocation2 + $0x428] sm:$0xff]  ;;  %v3046_v5 = vpack.c.bf16 %v104_v59, %v72_v58  ;;  %v140_v58 = vld [vmem:[#allocation2 + $0x270] sm:$0xff]  ;;  %v237_v3 = vld [vmem:[#allocation2 + $0x578] sm:$0xff] }
  0x9d   :  { %58 = vperm.xlu1 %3486, %v56_v7   ;;  %v3004_v31 = vpack.c.bf16 %v227_v24, %v195_v0  ;;  %v166_v7 = vld [vmem:[#allocation2 + $0x340] sm:$0xff]  ;;  %v263_v0 = vld [vmem:[#allocation2 + $0x648] sm:$0xff]  ;;  %v172_v59 = vld [vmem:[#allocation2 + $0x370] sm:$0xff] }
  0x9e   :  { %3487 = vpow2.f32 %v50_v6  ;;  %v134_v6 = vld [vmem:[#allocation2 + $0x240] sm:$0xff]  ;;  %v295_v24 = vld [vmem:[#allocation2 + $0x748] sm:$0xff] }
  0xa8   :  { %v3596_v23 = vpop.eup %3487 }
  0xa9   :  { %2932 = vmatmul.mubr.msk.f32.vlgmr.msra.gmra.mrb[0].mxu0 %vm318_vm3, %v3596_v23  ;;  %2933 = vmatmul.mubr.msk.f32.vlgmr.msra.gmra.mrb[0].mxu1 %vm318_vm3, %v3596_v23 }
  0xaa   :  { %2999 = vmatpush1.bf16.msra.mxu0 %v2998_v16  ;;  %3015 = vmatpush1.bf16.msra.mxu1 %v3014_v17  ;;  %v3034_v16 = vpack.c.bf16 %v166_v7, %v134_v6  ;;  %v3050_v17 = vpack.c.bf16 %v168_v11, %v136_v10  ;;  %v202_v6 = vld [vmem:[#allocation2 + $0x460] sm:$0xff]  ;;  %v204_v10 = vld [vmem:[#allocation2 + $0x470] sm:$0xff] }
  0xab   :  { %3001 = vmatprep.subr.bf16.mxu0 %v3000_v2  ;;  %3017 = vmatprep.subr.bf16.mxu1 %v3016_v20  ;;  %v3036_v2 = vpack.c.bf16 %v231_v13, %v199_v12  ;;  %v3052_v20 = vpack.c.bf16 %v233_v15, %v201_v14  ;;  %v234_v7 = vld [vmem:[#allocation2 + $0x560] sm:$0xff]  ;;  %v236_v11 = vld [vmem:[#allocation2 + $0x570] sm:$0xff]  ;;  %v267_v12 = vld [vmem:[#allocation2 + $0x668] sm:$0xff] }
  0xac   :  { %528 = vmatprep.mubr.f32.mxu0 %v3545_v41  ;;  %599 = vmatprep.mubr.f32.mxu1 %v3545_v41  ;;  %v299_v13 = vld [vmem:[#allocation2 + $0x768] sm:$0xff]  ;;  %v269_v14 = vld [vmem:[#allocation2 + $0x678] sm:$0xff] }
  0xad   :  { %v301_v15 = vld [vmem:[#allocation2 + $0x778] sm:$0xff] }
  0xae   :  { %3003 = vmatpush1.bf16.msra.mxu0 %v3002_v27  ;;  %3019 = vmatpush1.bf16.msra.mxu1 %v3018_v28  ;;  %v3038_v27 = vpack.c.bf16 %v230_v19, %v198_v18  ;;  %v3054_v28 = vpack.c.bf16 %v232_v22, %v200_v21  ;;  %v266_v18 = vld [vmem:[#allocation2 + $0x660] sm:$0xff]  ;;  %v268_v21 = vld [vmem:[#allocation2 + $0x670] sm:$0xff] }
  0xaf   :  { %3005 = vmatprep.subr.bf16.mxu0 %v3004_v31  ;;  %3021 = vmatprep.subr.bf16.mxu1 %v3020_v32  ;;  %v3040_v31 = vpack.c.bf16 %v295_v24, %v263_v0  ;;  %v3056_v32 = vpack.c.bf16 %v297_v26, %v265_v25  ;;  %v298_v19 = vld [vmem:[#allocation2 + $0x760] sm:$0xff]  ;;  %v300_v22 = vld [vmem:[#allocation2 + $0x770] sm:$0xff]  ;;  %v79_v0 = vld [vmem:[#allocation2 + $0x88] sm:$0xff] }
  0xb0   :  { %v111_v24 = vld [vmem:[#allocation2 + $0x188] sm:$0xff]  ;;  %v81_v25 = vld [vmem:[#allocation2 + $0x98] sm:$0xff] }
  0xb1   :  { %v113_v26 = vld [vmem:[#allocation2 + $0x198] sm:$0xff] }
  0xb2   :  { %3007 = vmatpush1.bf16.msra.mxu0 %v3006_v39  ;;  %3023 = vmatpush1.bf16.msra.mxu1 %v3022_v40  ;;  %v3042_v39 = vpack.c.bf16 %v294_v30, %v262_v29  ;;  %v3058_v40 = vpack.c.bf16 %v296_v34, %v264_v33  ;;  %v78_v29 = vld [vmem:[#allocation2 + $0x80] sm:$0xff]  ;;  %v80_v33 = vld [vmem:[#allocation2 + $0x90] sm:$0xff] }
  0xb3   :  { %3009 = vmatprep.subr.bf16.mxu0 %v3008_v44  ;;  %3025 = vmatprep.subr.bf16.mxu1 %v3024_v45  ;;  %v3060_v44 = vpack.c.bf16 %v107_v36, %v75_v35  ;;  %v3076_v45 = vpack.c.bf16 %v109_v38, %v77_v37  ;;  %v110_v30 = vld [vmem:[#allocation2 + $0x180] sm:$0xff]  ;;  %v112_v34 = vld [vmem:[#allocation2 + $0x190] sm:$0xff]  ;;  %v143_v35 = vld [vmem:[#allocation2 + $0x288] sm:$0xff] }
  0xb4   :  { %v175_v36 = vld [vmem:[#allocation2 + $0x388] sm:$0xff]  ;;  %v145_v37 = vld [vmem:[#allocation2 + $0x298] sm:$0xff] }
  0xb5   :  { %v177_v38 = vld [vmem:[#allocation2 + $0x398] sm:$0xff] }
  0xb6   :  { %3011 = vmatpush1.bf16.msra.mxu0 %v3010_v52  ;;  %3027 = vmatpush1.bf16.msra.mxu1 %v3026_v53  ;;  %v3062_v52 = vpack.c.bf16 %v106_v43, %v74_v42  ;;  %v3078_v53 = vpack.c.bf16 %v108_v47, %v76_v46  ;;  %v142_v42 = vld [vmem:[#allocation2 + $0x280] sm:$0xff]  ;;  %v144_v46 = vld [vmem:[#allocation2 + $0x290] sm:$0xff] }
  0xb7   :  { %3029 = vmatprep.subr.bf16.mxu0 %v3028_v56  ;;  %3045 = vmatprep.subr.bf16.mxu1 %v3044_v57  ;;  %v3064_v56 = vpack.c.bf16 %v171_v49, %v139_v48  ;;  %v3080_v57 = vpack.c.bf16 %v173_v51, %v141_v50  ;;  %v174_v43 = vld [vmem:[#allocation2 + $0x380] sm:$0xff]  ;;  %v176_v47 = vld [vmem:[#allocation2 + $0x390] sm:$0xff]  ;;  %v207_v48 = vld [vmem:[#allocation2 + $0x488] sm:$0xff] }
  0xb8   :  { %v239_v49 = vld [vmem:[#allocation2 + $0x588] sm:$0xff]  ;;  %v209_v50 = vld [vmem:[#allocation2 + $0x498] sm:$0xff] }
  0xb9   :  { %2934 = vmatmul.mubr.msk.f32.vlgmr.msra.gmra.mrb[2].mxu0 %vm318_vm3, %v3596_v23  ;;  %2935 = vmatmul.mubr.msk.f32.vlgmr.msra.gmra.mrb[2].mxu1 %vm318_vm3, %v3596_v23  ;;  %v241_v51 = vld [vmem:[#allocation2 + $0x598] sm:$0xff] }
  0xba   :  { %3031 = vmatpush1.bf16.msra.mxu0 %v3030_v4  ;;  %3047 = vmatpush1.bf16.msra.mxu1 %v3046_v5  ;;  %v3066_v4 = vpack.c.bf16 %v170_v55, %v138_v54  ;;  %v3082_v5 = vpack.c.bf16 %v172_v59, %v140_v58  ;;  %v206_v54 = vld [vmem:[#allocation2 + $0x480] sm:$0xff]  ;;  %v208_v58 = vld [vmem:[#allocation2 + $0x490] sm:$0xff] }
  0xbb   :  { %3033 = vmatprep.subr.bf16.mxu0 %v3032_v8  ;;  %3049 = vmatprep.subr.bf16.mxu1 %v3048_v9  ;;  %v3068_v8 = vpack.c.bf16 %v235_v63, %v203_v60  ;;  %v3084_v9 = vpack.c.bf16 %v237_v3, %v205_v1  ;;  %v238_v55 = vld [vmem:[#allocation2 + $0x580] sm:$0xff]  ;;  %v240_v59 = vld [vmem:[#allocation2 + $0x590] sm:$0xff]  ;;  %v271_v60 = vld [vmem:[#allocation2 + $0x688] sm:$0xff] }
  0xbc   :  { %670 = vmatprep.mubr.f32.mxu0 %v3545_v41  ;;  %741 = vmatprep.mubr.f32.mxu1 %v3545_v41  ;;  %v303_v63 = vld [vmem:[#allocation2 + $0x788] sm:$0xff]  ;;  %v273_v1 = vld [vmem:[#allocation2 + $0x698] sm:$0xff] }
  0xbd   :  { %v305_v3 = vld [vmem:[#allocation2 + $0x798] sm:$0xff] }
  0xbe   :  { %3035 = vmatpush1.bf16.msra.mxu0 %v3034_v16  ;;  %3051 = vmatpush1.bf16.msra.mxu1 %v3050_v17  ;;  %v3070_v16 = vpack.c.bf16 %v234_v7, %v202_v6  ;;  %v3086_v17 = vpack.c.bf16 %v236_v11, %v204_v10  ;;  %v270_v6 = vld [vmem:[#allocation2 + $0x680] sm:$0xff]  ;;  %v272_v10 = vld [vmem:[#allocation2 + $0x690] sm:$0xff] }
  0xbf   :  { %3037 = vmatprep.subr.bf16.mxu0 %v3036_v2  ;;  %3053 = vmatprep.subr.bf16.mxu1 %v3052_v20  ;;  %v3072_v2 = vpack.c.bf16 %v299_v13, %v267_v12  ;;  %v3088_v20 = vpack.c.bf16 %v301_v15, %v269_v14  ;;  %v302_v7 = vld [vmem:[#allocation2 + $0x780] sm:$0xff]  ;;  %v304_v11 = vld [vmem:[#allocation2 + $0x790] sm:$0xff]  ;;  %v83_v12 = vld [vmem:[#allocation2 + $0xa8] sm:$0xff] }
  0xc0   :  { %v115_v13 = vld [vmem:[#allocation2 + $0x1a8] sm:$0xff]  ;;  %v85_v14 = vld [vmem:[#allocation2 + $0xb8] sm:$0xff] }
  0xc1   :  { %v117_v15 = vld [vmem:[#allocation2 + $0x1b8] sm:$0xff] }
  0xc2   :  { %3039 = vmatpush1.bf16.msra.mxu0 %v3038_v27  ;;  %3055 = vmatpush1.bf16.msra.mxu1 %v3054_v28  ;;  %v3074_v27 = vpack.c.bf16 %v298_v19, %v266_v18  ;;  %v3090_v28 = vpack.c.bf16 %v300_v22, %v268_v21  ;;  %v82_v18 = vld [vmem:[#allocation2 + $0xa0] sm:$0xff]  ;;  %v84_v21 = vld [vmem:[#allocation2 + $0xb0] sm:$0xff] }
  0xc3   :  { %3041 = vmatprep.subr.bf16.mxu0 %v3040_v31  ;;  %3057 = vmatprep.subr.bf16.mxu1 %v3056_v32  ;;  %v3092_v31 = vpack.c.bf16 %v111_v24, %v79_v0  ;;  %v3108_v32 = vpack.c.bf16 %v113_v26, %v81_v25  ;;  %v114_v19 = vld [vmem:[#allocation2 + $0x1a0] sm:$0xff]  ;;  %v116_v22 = vld [vmem:[#allocation2 + $0x1b0] sm:$0xff]  ;;  %v147_v0 = vld [vmem:[#allocation2 + $0x2a8] sm:$0xff] }
  0xc4   :  { %v179_v24 = vld [vmem:[#allocation2 + $0x3a8] sm:$0xff]  ;;  %v149_v25 = vld [vmem:[#allocation2 + $0x2b8] sm:$0xff] }
  0xc5   :  { %v181_v26 = vld [vmem:[#allocation2 + $0x3b8] sm:$0xff] }
  0xc6   :  { %3043 = vmatpush1.bf16.msra.mxu0 %v3042_v39  ;;  %3059 = vmatpush1.bf16.msra.mxu1 %v3058_v40  ;;  %v3094_v39 = vpack.c.bf16 %v110_v30, %v78_v29  ;;  %v3110_v40 = vpack.c.bf16 %v112_v34, %v80_v33  ;;  %v146_v29 = vld [vmem:[#allocation2 + $0x2a0] sm:$0xff]  ;;  %v148_v33 = vld [vmem:[#allocation2 + $0x2b0] sm:$0xff] }
  0xc7   :  { %3061 = vmatprep.subr.bf16.mxu0 %v3060_v44  ;;  %3077 = vmatprep.subr.bf16.mxu1 %v3076_v45  ;;  %v3096_v44 = vpack.c.bf16 %v175_v36, %v143_v35  ;;  %v3112_v45 = vpack.c.bf16 %v177_v38, %v145_v37  ;;  %v178_v30 = vld [vmem:[#allocation2 + $0x3a0] sm:$0xff]  ;;  %v180_v34 = vld [vmem:[#allocation2 + $0x3b0] sm:$0xff]  ;;  %v211_v35 = vld [vmem:[#allocation2 + $0x4a8] sm:$0xff] }
  0xc8   :  { %v243_v36 = vld [vmem:[#allocation2 + $0x5a8] sm:$0xff]  ;;  %v213_v37 = vld [vmem:[#allocation2 + $0x4b8] sm:$0xff] }
  0xc9   :  { %2936 = vmatmul.mubr.msk.f32.vlgmr.msra.gmra.mrb[4].mxu0 %vm318_vm3, %v3596_v23  ;;  %2937 = vmatmul.mubr.msk.f32.vlgmr.msra.gmra.mrb[4].mxu1 %vm318_vm3, %v3596_v23  ;;  %v245_v38 = vld [vmem:[#allocation2 + $0x5b8] sm:$0xff] }
  0xca   :  { %3063 = vmatpush1.bf16.msra.mxu0 %v3062_v52  ;;  %3079 = vmatpush1.bf16.msra.mxu1 %v3078_v53  ;;  %v3098_v52 = vpack.c.bf16 %v174_v43, %v142_v42  ;;  %v3114_v53 = vpack.c.bf16 %v176_v47, %v144_v46  ;;  %v210_v42 = vld [vmem:[#allocation2 + $0x4a0] sm:$0xff]  ;;  %v212_v46 = vld [vmem:[#allocation2 + $0x4b0] sm:$0xff] }
  0xcb   :  { %3065 = vmatprep.subr.bf16.mxu0 %v3064_v56  ;;  %3081 = vmatprep.subr.bf16.mxu1 %v3080_v57  ;;  %v3100_v56 = vpack.c.bf16 %v239_v49, %v207_v48  ;;  %v3116_v57 = vpack.c.bf16 %v241_v51, %v209_v50  ;;  %v242_v43 = vld [vmem:[#allocation2 + $0x5a0] sm:$0xff]  ;;  %v244_v47 = vld [vmem:[#allocation2 + $0x5b0] sm:$0xff]  ;;  %v275_v48 = vld [vmem:[#allocation2 + $0x6a8] sm:$0xff] }
  0xcc   :  { %812 = vmatprep.mubr.f32.mxu0 %v3545_v41  ;;  %883 = vmatprep.mubr.f32.mxu1 %v3545_v41  ;;  %v307_v49 = vld [vmem:[#allocation2 + $0x7a8] sm:$0xff]  ;;  %v277_v50 = vld [vmem:[#allocation2 + $0x6b8] sm:$0xff] }
  0xcd   :  { %v309_v51 = vld [vmem:[#allocation2 + $0x7b8] sm:$0xff] }
  0xce   :  { %3067 = vmatpush1.bf16.msra.mxu0 %v3066_v4  ;;  %3083 = vmatpush1.bf16.msra.mxu1 %v3082_v5  ;;  %v3102_v4 = vpack.c.bf16 %v238_v55, %v206_v54  ;;  %v3118_v5 = vpack.c.bf16 %v240_v59, %v208_v58  ;;  %v274_v54 = vld [vmem:[#allocation2 + $0x6a0] sm:$0xff]  ;;  %v276_v58 = vld [vmem:[#allocation2 + $0x6b0] sm:$0xff] }
  0xcf   :  { %3069 = vmatprep.subr.bf16.mxu0 %v3068_v8  ;;  %3085 = vmatprep.subr.bf16.mxu1 %v3084_v9  ;;  %v3104_v8 = vpack.c.bf16 %v303_v63, %v271_v60  ;;  %v3120_v9 = vpack.c.bf16 %v305_v3, %v273_v1  ;;  %v306_v55 = vld [vmem:[#allocation2 + $0x7a0] sm:$0xff]  ;;  %v308_v59 = vld [vmem:[#allocation2 + $0x7b0] sm:$0xff]  ;;  %v87_v60 = vld [vmem:[#allocation2 + $0xc8] sm:$0xff] }
  0xd0   :  { %v119_v63 = vld [vmem:[#allocation2 + $0x1c8] sm:$0xff]  ;;  %v89_v1 = vld [vmem:[#allocation2 + $0xd8] sm:$0xff] }
  0xd1   :  { %v121_v3 = vld [vmem:[#allocation2 + $0x1d8] sm:$0xff] }
  0xd2   :  { %3071 = vmatpush1.bf16.msra.mxu0 %v3070_v16  ;;  %3087 = vmatpush1.bf16.msra.mxu1 %v3086_v17  ;;  %v3106_v16 = vpack.c.bf16 %v302_v7, %v270_v6  ;;  %v3122_v17 = vpack.c.bf16 %v304_v11, %v272_v10  ;;  %v86_v6 = vld [vmem:[#allocation2 + $0xc0] sm:$0xff]  ;;  %v88_v10 = vld [vmem:[#allocation2 + $0xd0] sm:$0xff] }
  0xd3   :  { %3073 = vmatprep.subr.bf16.mxu0 %v3072_v2  ;;  %3089 = vmatprep.subr.bf16.mxu1 %v3088_v20  ;;  %v3124_v2 = vpack.c.bf16 %v115_v13, %v83_v12  ;;  %v3140_v20 = vpack.c.bf16 %v117_v15, %v85_v14  ;;  %v118_v7 = vld [vmem:[#allocation2 + $0x1c0] sm:$0xff]  ;;  %v120_v11 = vld [vmem:[#allocation2 + $0x1d0] sm:$0xff]  ;;  %v151_v12 = vld [vmem:[#allocation2 + $0x2c8] sm:$0xff] }
  0xd4   :  { %v183_v13 = vld [vmem:[#allocation2 + $0x3c8] sm:$0xff]  ;;  %v153_v14 = vld [vmem:[#allocation2 + $0x2d8] sm:$0xff] }
  0xd5   :  { %v185_v15 = vld [vmem:[#allocation2 + $0x3d8] sm:$0xff] }
  0xd6   :  { %3075 = vmatpush1.bf16.msra.mxu0 %v3074_v27  ;;  %3091 = vmatpush1.bf16.msra.mxu1 %v3090_v28  ;;  %v3126_v27 = vpack.c.bf16 %v114_v19, %v82_v18  ;;  %v3142_v28 = vpack.c.bf16 %v116_v22, %v84_v21  ;;  %v150_v18 = vld [vmem:[#allocation2 + $0x2c0] sm:$0xff]  ;;  %v152_v21 = vld [vmem:[#allocation2 + $0x2d0] sm:$0xff] }
  0xd7   :  { %3093 = vmatprep.subr.bf16.mxu0 %v3092_v31  ;;  %3109 = vmatprep.subr.bf16.mxu1 %v3108_v32  ;;  %v3128_v31 = vpack.c.bf16 %v179_v24, %v147_v0  ;;  %v3144_v32 = vpack.c.bf16 %v181_v26, %v149_v25  ;;  %v182_v19 = vld [vmem:[#allocation2 + $0x3c0] sm:$0xff]  ;;  %v184_v22 = vld [vmem:[#allocation2 + $0x3d0] sm:$0xff]  ;;  %v215_v0 = vld [vmem:[#allocation2 + $0x4c8] sm:$0xff] }
  0xd8   :  { %v247_v24 = vld [vmem:[#allocation2 + $0x5c8] sm:$0xff]  ;;  %v217_v25 = vld [vmem:[#allocation2 + $0x4d8] sm:$0xff] }
  0xd9   :  { %2938 = vmatmul.mubr.msk.f32.vlgmr.msra.gmra.mrb[6].mxu0 %vm318_vm3, %v3596_v23  ;;  %2939 = vmatmul.mubr.msk.f32.vlgmr.msra.gmra.mrb[6].mxu1 %vm318_vm3, %v3596_v23  ;;  %v249_v26 = vld [vmem:[#allocation2 + $0x5d8] sm:$0xff] }
  0xda   :  { %3095 = vmatpush1.bf16.msra.mxu0 %v3094_v39  ;;  %3111 = vmatpush1.bf16.msra.mxu1 %v3110_v40  ;;  %v3130_v39 = vpack.c.bf16 %v178_v30, %v146_v29  ;;  %v3146_v40 = vpack.c.bf16 %v180_v34, %v148_v33  ;;  %v214_v29 = vld [vmem:[#allocation2 + $0x4c0] sm:$0xff]  ;;  %v216_v33 = vld [vmem:[#allocation2 + $0x4d0] sm:$0xff] }
  0xdb   :  { %3097 = vmatprep.subr.bf16.mxu0 %v3096_v44  ;;  %3113 = vmatprep.subr.bf16.mxu1 %v3112_v45  ;;  %v3132_v44 = vpack.c.bf16 %v243_v36, %v211_v35  ;;  %v3148_v45 = vpack.c.bf16 %v245_v38, %v213_v37  ;;  %v246_v30 = vld [vmem:[#allocation2 + $0x5c0] sm:$0xff]  ;;  %v248_v34 = vld [vmem:[#allocation2 + $0x5d0] sm:$0xff]  ;;  %v279_v35 = vld [vmem:[#allocation2 + $0x6c8] sm:$0xff] }
  0xdc   :  { %954 = vmatprep.mubr.f32.mxu0 %v3545_v41  ;;  %1025 = vmatprep.mubr.f32.mxu1 %v3545_v41  ;;  %v311_v36 = vld [vmem:[#allocation2 + $0x7c8] sm:$0xff]  ;;  %v281_v37 = vld [vmem:[#allocation2 + $0x6d8] sm:$0xff] }
  0xdd   :  { %v313_v38 = vld [vmem:[#allocation2 + $0x7d8] sm:$0xff] }
  0xde   :  { %3099 = vmatpush1.bf16.msra.mxu0 %v3098_v52  ;;  %3115 = vmatpush1.bf16.msra.mxu1 %v3114_v53  ;;  %v3134_v52 = vpack.c.bf16 %v242_v43, %v210_v42  ;;  %v3150_v53 = vpack.c.bf16 %v244_v47, %v212_v46  ;;  %v278_v42 = vld [vmem:[#allocation2 + $0x6c0] sm:$0xff]  ;;  %v280_v46 = vld [vmem:[#allocation2 + $0x6d0] sm:$0xff] }
  0xdf   :  { %3101 = vmatprep.subr.bf16.mxu0 %v3100_v56  ;;  %3117 = vmatprep.subr.bf16.mxu1 %v3116_v57  ;;  %v3136_v56 = vpack.c.bf16 %v307_v49, %v275_v48  ;;  %v3152_v57 = vpack.c.bf16 %v309_v51, %v277_v50  ;;  %v310_v43 = vld [vmem:[#allocation2 + $0x7c0] sm:$0xff]  ;;  %v312_v47 = vld [vmem:[#allocation2 + $0x7d0] sm:$0xff]  ;;  %v91_v48 = vld [vmem:[#allocation2 + $0xe8] sm:$0xff] }
  0xe0   :  { %v123_v49 = vld [vmem:[#allocation2 + $0x1e8] sm:$0xff]  ;;  %v93_v50 = vld [vmem:[#allocation2 + $0xf8] sm:$0xff] }
  0xe1   :  { %v125_v51 = vld [vmem:[#allocation2 + $0x1f8] sm:$0xff] }
  0xe2   :  { %3103 = vmatpush1.bf16.msra.mxu0 %v3102_v4  ;;  %3119 = vmatpush1.bf16.msra.mxu1 %v3118_v5  ;;  %v3138_v4 = vpack.c.bf16 %v306_v55, %v274_v54  ;;  %v3154_v5 = vpack.c.bf16 %v308_v59, %v276_v58  ;;  %v90_v54 = vld [vmem:[#allocation2 + $0xe0] sm:$0xff]  ;;  %v92_v58 = vld [vmem:[#allocation2 + $0xf0] sm:$0xff] }
  0xe3   :  { %3105 = vmatprep.subr.bf16.mxu0 %v3104_v8  ;;  %3121 = vmatprep.subr.bf16.mxu1 %v3120_v9  ;;  %v3156_v8 = vpack.c.bf16 %v119_v63, %v87_v60  ;;  %v3172_v9 = vpack.c.bf16 %v121_v3, %v89_v1  ;;  %v122_v55 = vld [vmem:[#allocation2 + $0x1e0] sm:$0xff]  ;;  %v124_v59 = vld [vmem:[#allocation2 + $0x1f0] sm:$0xff]  ;;  %v155_v60 = vld [vmem:[#allocation2 + $0x2e8] sm:$0xff] }
  0xe4   :  { %v187_v63 = vld [vmem:[#allocation2 + $0x3e8] sm:$0xff]  ;;  %v157_v1 = vld [vmem:[#allocation2 + $0x2f8] sm:$0xff] }
  0xe5   :  { %v189_v3 = vld [vmem:[#allocation2 + $0x3f8] sm:$0xff] }
  0xe6   :  { %3107 = vmatpush1.bf16.msra.mxu0 %v3106_v16  ;;  %3123 = vmatpush1.bf16.msra.mxu1 %v3122_v17  ;;  %v3158_v16 = vpack.c.bf16 %v118_v7, %v86_v6  ;;  %v3174_v17 = vpack.c.bf16 %v120_v11, %v88_v10  ;;  %v154_v6 = vld [vmem:[#allocation2 + $0x2e0] sm:$0xff]  ;;  %v3208_v10 = vpack.c.bf16 %v189_v3, %v157_v1  ;;  %v156_v11 = vld [vmem:[#allocation2 + $0x2f0] sm:$0xff]  ;;  %v1587_v3 = vld [vmem:[#allocation2 + $0xc08] sm:$0xff] }
  0xe7   :  { %3125 = vmatprep.subr.bf16.mxu0 %v3124_v2  ;;  %3141 = vmatprep.subr.bf16.mxu1 %v3140_v20  ;;  %v3160_v2 = vpack.c.bf16 %v183_v13, %v151_v12  ;;  %v3176_v20 = vpack.c.bf16 %v185_v15, %v153_v14  ;;  %v186_v7 = vld [vmem:[#allocation2 + $0x3e0] sm:$0xff]  ;;  %v188_v12 = vld [vmem:[#allocation2 + $0x3f0] sm:$0xff]  ;;  %v219_v13 = vld [vmem:[#allocation2 + $0x4e8] sm:$0xff] }
  0xe8   :  { %v251_v14 = vld [vmem:[#allocation2 + $0x5e8] sm:$0xff]  ;;  %v221_v15 = vld [vmem:[#allocation2 + $0x4f8] sm:$0xff]  ;;  %v1556_v1 = vld [vmem:[#allocation2 + $0xb10] sm:$0xff] }
  0xe9   :  { %2940 = vmatmul.mubr.msk.f32.vlgmr.msra.gmra.mrb[8].mxu0 %vm318_vm3, %v3596_v23  ;;  %2941 = vmatmul.mubr.msk.f32.vlgmr.msra.gmra.mrb[8].mxu1 %vm318_vm3, %v3596_v23 }
  0xea   :  { %3127 = vmatpush1.bf16.msra.mxu0 %v3126_v27  ;;  %3143 = vmatpush1.bf16.msra.mxu1 %v3142_v28  ;;  %v3162_v27 = vpack.c.bf16 %v182_v19, %v150_v18  ;;  %v3178_v28 = vpack.c.bf16 %v184_v22, %v152_v21  ;;  %v3194_v18 = vpack.c.bf16 %v186_v7, %v154_v6  ;;  %v1621_v6 = vld [vmem:[#allocation2 + $0xd18] sm:$0xff] }
  0xeb   :  { %3129 = vmatprep.subr.bf16.mxu0 %v3128_v31  ;;  %3145 = vmatprep.subr.bf16.mxu1 %v3144_v32  ;;  %v3164_v31 = vpack.c.bf16 %v247_v24, %v215_v0  ;;  %v3180_v32 = vpack.c.bf16 %v249_v26, %v217_v25  ;;  %v3210_v19 = vpack.c.bf16 %v188_v12, %v156_v11  ;;  %v220_v0 = vld [vmem:[#allocation2 + $0x4f0] sm:$0xff]  ;;  %v283_v25 = vld [vmem:[#allocation2 + $0x6e8] sm:$0xff] }
  0xec   :  { %1096 = vmatprep.mubr.f32.mxu0 %v3545_v41  ;;  %1167 = vmatprep.mubr.f32.mxu1 %v3545_v41  ;;  %v3196_v21 = vpack.c.bf16 %v251_v14, %v219_v13  ;;  %v252_v24 = vld [vmem:[#allocation2 + $0x5f0] sm:$0xff]  ;;  %v315_v26 = vld [vmem:[#allocation2 + $0x7e8] sm:$0xff] }
  0xed   :  { %v1588_v13 = vld [vmem:[#allocation2 + $0xc10] sm:$0xff] }
  0xee   :  { %3131 = vmatpush1.bf16.msra.mxu0 %v3130_v39  ;;  %3147 = vmatpush1.bf16.msra.mxu1 %v3146_v40  ;;  %v3166_v39 = vpack.c.bf16 %v246_v30, %v214_v29  ;;  %v3182_v40 = vpack.c.bf16 %v248_v34, %v216_v33  ;;  %v3214_v29 = vpack.c.bf16 %v252_v24, %v220_v0  ;;  %v282_v30 = vld [vmem:[#allocation2 + $0x6e0] sm:$0xff]  ;;  %v284_v34 = vld [vmem:[#allocation2 + $0x6f0] sm:$0xff] }
  0xef   :  { %3133 = vmatprep.subr.bf16.mxu0 %v3132_v44  ;;  %3149 = vmatprep.subr.bf16.mxu1 %v3148_v45  ;;  %v3168_v44 = vpack.c.bf16 %v311_v36, %v279_v35  ;;  %v3184_v45 = vpack.c.bf16 %v313_v38, %v281_v37  ;;  %v316_v35 = vld [vmem:[#allocation2 + $0x7f0] sm:$0xff]  ;;  %v1459_v36 = vld [vmem:[#allocation2 + $0x808] sm:$0xff]  ;;  %v1461_v38 = vld [vmem:[#allocation2 + $0x818] sm:$0xff] }
  0xf0   :  { %v1491_v37 = vld [vmem:[#allocation2 + $0x908] sm:$0xff]  ;;  %v1620_v14 = vld [vmem:[#allocation2 + $0xd10] sm:$0xff] }
  0xf1   :  { %v1652_v0 = vld [vmem:[#allocation2 + $0xe10] sm:$0xff] }
  0xf2   :  { %3135 = vmatpush1.bf16.msra.mxu0 %v3134_v52  ;;  %3151 = vmatpush1.bf16.msra.mxu1 %v3150_v53  ;;  %v3170_v52 = vpack.c.bf16 %v310_v43, %v278_v42  ;;  %v3186_v53 = vpack.c.bf16 %v312_v47, %v280_v46  ;;  %v3218_v43 = vpack.c.bf16 %v316_v35, %v284_v34  ;;  %v1684_v24 = vld [vmem:[#allocation2 + $0xf10] sm:$0xff] }
  0xf3   :  { %3137 = vmatprep.subr.bf16.mxu0 %v3136_v56  ;;  %3153 = vmatprep.subr.bf16.mxu1 %v3152_v57  ;;  %v3188_v56 = vpack.c.bf16 %v123_v49, %v91_v48  ;;  %v3204_v57 = vpack.c.bf16 %v125_v51, %v93_v50  ;;  %v3220_v46 = vpack.c.bf16 %v1491_v37, %v1459_v36  ;;  %v1460_v48 = vld [vmem:[#allocation2 + $0x810] sm:$0xff]  ;;  %v1523_v50 = vld [vmem:[#allocation2 + $0xa08] sm:$0xff] }
  0xf4   :  { %v1492_v49 = vld [vmem:[#allocation2 + $0x910] sm:$0xff]  ;;  %v1555_v51 = vld [vmem:[#allocation2 + $0xb08] sm:$0xff] }
  0xf5   :  { %v1464_v35 = vld [vmem:[#allocation2 + $0x830] sm:$0xff]  ;;  %v1527_v37 = vld [vmem:[#allocation2 + $0xa28] sm:$0xff] }
  0xf6   :  { %3139 = vmatpush1.bf16.msra.mxu0 %v3138_v4  ;;  %3155 = vmatpush1.bf16.msra.mxu1 %v3154_v5  ;;  %v3190_v4 = vpack.c.bf16 %v122_v55, %v90_v54  ;;  %v3206_v5 = vpack.c.bf16 %v124_v59, %v92_v58  ;;  %v1554_v58 = vld [vmem:[#allocation2 + $0xb00] sm:$0xff]  ;;  %v3224_v59 = vpack.c.bf16 %v1555_v51, %v1523_v50  ;;  %v1496_v36 = vld [vmem:[#allocation2 + $0x930] sm:$0xff]  ;;  %v1591_v51 = vld [vmem:[#allocation2 + $0xc28] sm:$0xff] }
  0xf7   :  { %3157 = vmatprep.subr.bf16.mxu0 %v3156_v8  ;;  %3173 = vmatprep.subr.bf16.mxu1 %v3172_v9  ;;  %v45_v8 = vpop.permute.xlu1 %44  ;;  %v3192_v9 = vpack.c.bf16 %v187_v63, %v155_v60  ;;  %v1524_v63 = vld [vmem:[#allocation2 + $0xa10] sm:$0xff] }
  0xf8   :  { %v1560_v50 = vld [vmem:[#allocation2 + $0xb30] sm:$0xff] }
  0xf9   :  { %2942 = vmatmul.mubr.msk.f32.vlgmr.msra.gmra.mrb[10].mxu0 %vm318_vm3, %v3596_v23  ;;  %2943 = vmatmul.mubr.msk.f32.vlgmr.msra.gmra.mrb[10].mxu1 %vm318_vm3, %v3596_v23 }
  0xfa   :  { %3159 = vmatpush1.bf16.msra.mxu0 %v3158_v16  ;;  %3175 = vmatpush1.bf16.msra.mxu1 %v3174_v17  ;;  %v253_v16 = vld [vmem:[#allocation2 + $0x5f8] sm:$0xff]  ;;  %v47_v17 = vsub.f32 %v36_v62, %v45_v8  ;;  %v3242_v8 = vpack.c.bf16 %v1556_v1, %v1524_v63  ;;  %v1592_v63 = vld [vmem:[#allocation2 + $0xc30] sm:$0xff] }
  0xfb   :  { %3161 = vmatprep.subr.bf16.mxu0 %v3160_v2  ;;  %3177 = vmatprep.subr.bf16.mxu1 %v3176_v20  ;;  %v218_v2 = vld [vmem:[#allocation2 + $0x4e0] sm:$0xff]  ;;  %v3212_v22 = vpack.c.bf16 %v253_v16, %v221_v15  ;;  %v1651_v15 = vld [vmem:[#allocation2 + $0xe08] sm:$0xff]  ;;  %v1624_v1 = vld [vmem:[#allocation2 + $0xd30] sm:$0xff] }
  0xfc   :  { %1238 = vmatprep.mubr.f32.mxu0 %v3545_v41  ;;  %1309 = vmatprep.mubr.f32.mxu1 %v3545_v41  ;;  %v250_v20 = vld [vmem:[#allocation2 + $0x5e0] sm:$0xff]  ;;  %v52_v61 = vmul.f32 %v47_v17, %v47_v17  ;;  %v1683_v16 = vld [vmem:[#allocation2 + $0xf08] sm:$0xff]  ;;  %v1653_v17 = vld [vmem:[#allocation2 + $0xe18] sm:$0xff] }
  0xfd   :  { %v3198_v62 = vpack.c.bf16 %v250_v20, %v218_v2  ;;  %v1650_v2 = vld [vmem:[#allocation2 + $0xe00] sm:$0xff] }
  0xfe   :  { %3163 = vmatpush1.bf16.msra.mxu0 %v3162_v27  ;;  %3179 = vmatpush1.bf16.msra.mxu1 %v3178_v28  ;;  %v285_v27 = vld [vmem:[#allocation2 + $0x6f8] sm:$0xff]  ;;  %v1682_v20 = vld [vmem:[#allocation2 + $0xf00] sm:$0xff] }
  0xff   :  { %3165 = vmatprep.subr.bf16.mxu0 %v3164_v31  ;;  %3181 = vmatprep.subr.bf16.mxu1 %v3180_v32  ;;  %v317_v28 = vld [vmem:[#allocation2 + $0x7f8] sm:$0xff]  ;;  %v314_v31 = vld [vmem:[#allocation2 + $0x7e0] sm:$0xff]  ;;  %v3200_v32 = vpack.c.bf16 %v315_v26, %v283_v25  ;;  %v1463_v25 = vld [vmem:[#allocation2 + $0x828] sm:$0xff] }
 0x100   :  { %v3216_v33 = vpack.c.bf16 %v317_v28, %v285_v27  ;;  %v3202_v42 = vpack.c.bf16 %v314_v31, %v282_v30  ;;  %v1495_v27 = vld [vmem:[#allocation2 + $0x928] sm:$0xff]  ;;  %v1465_v28 = vld [vmem:[#allocation2 + $0x838] sm:$0xff]  ;;  %v1462_v30 = vld [vmem:[#allocation2 + $0x820] sm:$0xff] }
 0x101   :  { %v1494_v31 = vld [vmem:[#allocation2 + $0x920] sm:$0xff] }
 0x102   :  { %3167 = vmatpush1.bf16.msra.mxu0 %v3166_v39  ;;  %3183 = vmatpush1.bf16.msra.mxu1 %v3182_v40  ;;  %v1493_v39 = vld [vmem:[#allocation2 + $0x918] sm:$0xff]  ;;  %v53_v40 = vmul.f32 -0.125, %v52_v61 }
 0x103   :  { %3169 = vmatprep.subr.bf16.mxu0 %v3168_v44  ;;  %3185 = vmatprep.subr.bf16.mxu1 %v3184_v45  ;;  %v1458_v44 = vld [vmem:[#allocation2 + $0x800] sm:$0xff]  ;;  %v3236_v47 = vpack.c.bf16 %v1493_v39, %v1461_v38  ;;  %v1497_v61 = vld [vmem:[#allocation2 + $0x938] sm:$0xff]  ;;  %v1559_v38 = vld [vmem:[#allocation2 + $0xb28] sm:$0xff] }
 0x104   :  { %v1490_v45 = vld [vmem:[#allocation2 + $0x900] sm:$0xff]  ;;  %v54_v54 = vmul.f32 1.442695, %v53_v40  ;;  %v3268_v34 = vpack.c.bf16 %v1497_v61, %v1465_v28  ;;  %v1529_v39 = vld [vmem:[#allocation2 + $0xa38] sm:$0xff] }
 0x105   :  { %v3222_v55 = vpack.c.bf16 %v1490_v45, %v1458_v44  ;;  %v1561_v40 = vld [vmem:[#allocation2 + $0xb38] sm:$0xff]  ;;  %v3270_v44 = vpack.c.bf16 %v1496_v36, %v1464_v35  ;;  %v1526_v45 = vld [vmem:[#allocation2 + $0xa20] sm:$0xff]  ;;  %v1595_v35 = vld [vmem:[#allocation2 + $0xc48] sm:$0xff] }
 0x106   :  { %3171 = vmatpush1.bf16.msra.mxu0 %v3170_v52  ;;  %3187 = vmatpush1.bf16.msra.mxu1 %v3186_v53  ;;  %v1525_v52 = vld [vmem:[#allocation2 + $0xa18] sm:$0xff]  ;;  %3489 = vpow2.f32 %v54_v54  ;;  %v1627_v36 = vld [vmem:[#allocation2 + $0xd48] sm:$0xff] }
 0x107   :  { %3189 = vmatprep.subr.bf16.mxu0 %v3188_v56  ;;  %3205 = vmatprep.subr.bf16.mxu1 %v3204_v57  ;;  %v1557_v53 = vld [vmem:[#allocation2 + $0xb18] sm:$0xff]  ;;  %v3238_v56 = vpack.c.bf16 %v1492_v49, %v1460_v48  ;;  %v1522_v57 = vld [vmem:[#allocation2 + $0xa00] sm:$0xff]  ;;  %v3272_v48 = vpack.c.bf16 %v1561_v40, %v1529_v39  ;;  %v1528_v49 = vld [vmem:[#allocation2 + $0xa30] sm:$0xff] }
 0x108   :  { %v3240_v60 = vpack.c.bf16 %v1557_v53, %v1525_v52  ;;  %v3226_v7 = vpack.c.bf16 %v1554_v58, %v1522_v57  ;;  %v1623_v52 = vld [vmem:[#allocation2 + $0xd28] sm:$0xff]  ;;  %v1593_v53 = vld [vmem:[#allocation2 + $0xc38] sm:$0xff]  ;;  %v1590_v57 = vld [vmem:[#allocation2 + $0xc20] sm:$0xff] }
 0x109   :  { %2944 = vmatmul.mubr.msk.f32.vlgmr.msra.gmra.mrb[12].mxu0 %vm318_vm3, %v3596_v23  ;;  %2945 = vmatmul.mubr.msk.f32.vlgmr.msra.gmra.mrb[12].mxu1 %vm318_vm3, %v3596_v23  ;;  %v1625_v54 = vld [vmem:[#allocation2 + $0xd38] sm:$0xff]  ;;  %v1622_v58 = vld [vmem:[#allocation2 + $0xd20] sm:$0xff] }
 0x10a   :  { %3191 = vmatpush1.bf16.msra.mxu0 %v3190_v4  ;;  %3207 = vmatpush1.bf16.msra.mxu1 %v3206_v5  ;;  %v1619_v4 = vld [vmem:[#allocation2 + $0xd08] sm:$0xff]  ;;  %v1589_v5 = vld [vmem:[#allocation2 + $0xc18] sm:$0xff] }
 0x10b   :  { %3193 = vmatprep.subr.bf16.mxu0 %v3192_v9  ;;  %3209 = vmatprep.subr.bf16.mxu1 %v3208_v10  ;;  %v1586_v9 = vld [vmem:[#allocation2 + $0xc00] sm:$0xff]  ;;  %v3228_v11 = vpack.c.bf16 %v1619_v4, %v1587_v3  ;;  %v3244_v12 = vpack.c.bf16 %v1621_v6, %v1589_v5  ;;  %v1655_v3 = vld [vmem:[#allocation2 + $0xe28] sm:$0xff]  ;;  %v1657_v5 = vld [vmem:[#allocation2 + $0xe38] sm:$0xff] }
 0x10c   :  { %1380 = vmatprep.mubr.f32.mxu0 %v3545_v41  ;;  %1451 = vmatprep.mubr.f32.mxu1 %v3545_v41  ;;  %v1618_v10 = vld [vmem:[#allocation2 + $0xd00] sm:$0xff]  ;;  %v1687_v4 = vld [vmem:[#allocation2 + $0xf28] sm:$0xff]  ;;  %v1689_v6 = vld [vmem:[#allocation2 + $0xf38] sm:$0xff] }
 0x10d   :  { %v1565_v28 = vld [vmem:[#allocation2 + $0xb58] sm:$0xff] }
 0x10e   :  { %3195 = vmatpush1.bf16.msra.mxu0 %v3194_v18  ;;  %3211 = vmatpush1.bf16.msra.mxu1 %v3210_v19  ;;  %v1685_v18 = vld [vmem:[#allocation2 + $0xf18] sm:$0xff]  ;;  %v3246_v19 = vpack.c.bf16 %v1620_v14, %v1588_v13  ;;  %v1656_v13 = vld [vmem:[#allocation2 + $0xe30] sm:$0xff] }
 0x10f   :  { %3197 = vmatprep.subr.bf16.mxu0 %v3196_v21  ;;  %3213 = vmatprep.subr.bf16.mxu1 %v3212_v22  ;;  %v3232_v21 = vpack.c.bf16 %v1683_v16, %v1651_v15  ;;  %v3248_v22 = vpack.c.bf16 %v1685_v18, %v1653_v17  ;;  %v1688_v14 = vld [vmem:[#allocation2 + $0xf30] sm:$0xff]  ;;  %v1467_v15 = vld [vmem:[#allocation2 + $0x848] sm:$0xff]  ;;  %v1469_v17 = vld [vmem:[#allocation2 + $0x858] sm:$0xff] }
 0x110   :  { %v1499_v16 = vld [vmem:[#allocation2 + $0x948] sm:$0xff]  ;;  %v1501_v18 = vld [vmem:[#allocation2 + $0x958] sm:$0xff] }
 0x112   :  { %3199 = vmatpush1.bf16.msra.mxu0 %v3198_v62  ;;  %3215 = vmatpush1.bf16.msra.mxu1 %v3214_v29  ;;  %v3234_v62 = vpack.c.bf16 %v1682_v20, %v1650_v2  ;;  %v3250_v29 = vpack.c.bf16 %v1684_v24, %v1652_v0  ;;  %v1466_v2 = vld [vmem:[#allocation2 + $0x840] sm:$0xff]  ;;  %v1468_v0 = vld [vmem:[#allocation2 + $0x850] sm:$0xff] }
 0x113   :  { %3201 = vmatprep.subr.bf16.mxu0 %v3200_v32  ;;  %3217 = vmatprep.subr.bf16.mxu1 %v3216_v33  ;;  %v3490_v32 = vpop.eup %3489  ;;  %v3252_v33 = vpack.c.bf16 %v1495_v27, %v1463_v25  ;;  %v1498_v20 = vld [vmem:[#allocation2 + $0x940] sm:$0xff]  ;;  %v1500_v24 = vld [vmem:[#allocation2 + $0x950] sm:$0xff]  ;;  %v1531_v25 = vld [vmem:[#allocation2 + $0xa48] sm:$0xff] }
 0x114   :  { %v1533_v27 = vld [vmem:[#allocation2 + $0xa58] sm:$0xff]  ;;  %v3286_v61 = vpack.c.bf16 %v1498_v20, %v1466_v2 }
 0x116   :  { %3203 = vmatpush1.bf16.msra.mxu0 %v3202_v42  ;;  %3219 = vmatpush1.bf16.msra.mxu1 %v3218_v43  ;;  %v3254_v43 = vpack.c.bf16 %v1494_v31, %v1462_v30  ;;  %v1562_v30 = vld [vmem:[#allocation2 + $0xb40] sm:$0xff] }
 0x117   :  { %3221 = vmatprep.subr.bf16.mxu0 %v3220_v46  ;;  %3237 = vmatprep.subr.bf16.mxu1 %v3236_v47  ;;  %v1558_v46 = vld [vmem:[#allocation2 + $0xb20] sm:$0xff]  ;;  %v3256_v47 = vpack.c.bf16 %v1559_v38, %v1527_v37  ;;  %v1597_v37 = vld [vmem:[#allocation2 + $0xc58] sm:$0xff] }
 0x118   :  { %v1629_v38 = vld [vmem:[#allocation2 + $0xd58] sm:$0xff] }
 0x119   :  { %2946 = vmatmul.mubr.msk.f32.vlgmr.msra.gmra.mrb[14].mxu0 %vm318_vm3, %v3596_v23  ;;  %2947 = vmatmul.mubr.msk.f32.vlgmr.msra.gmra.mrb[14].mxu1 %vm318_vm3, %v3596_v23  ;;  %v3230_v23 = vpack.c.bf16 %v1618_v10, %v1586_v9  ;;  %v1654_v9 = vld [vmem:[#allocation2 + $0xe20] sm:$0xff] }
 0x11a   :  { %3223 = vmatpush1.bf16.msra.mxu0 %v3222_v55  ;;  %3239 = vmatpush1.bf16.msra.mxu1 %v3238_v56  ;;  %v3258_v55 = vpack.c.bf16 %v1558_v46, %v1526_v45  ;;  %v3274_v56 = vpack.c.bf16 %v1560_v50, %v1528_v49  ;;  %v1686_v10 = vld [vmem:[#allocation2 + $0xf20] sm:$0xff]  ;;  %v3292_v45 = vpack.c.bf16 %v1627_v36, %v1595_v35  ;;  %v1659_v49 = vld [vmem:[#allocation2 + $0xe48] sm:$0xff]  ;;  %v1665_v35 = vld [vmem:[#allocation2 + $0xe78] sm:$0xff] }
 0x11b   :  { %3225 = vmatprep.subr.bf16.mxu0 %v3224_v59  ;;  %3241 = vmatprep.subr.bf16.mxu1 %v3240_v60  ;;  %v3260_v59 = vpack.c.bf16 %v1623_v52, %v1591_v51  ;;  %v3276_v60 = vpack.c.bf16 %v1625_v54, %v1593_v53  ;;  %v3308_v46 = vpack.c.bf16 %v1629_v38, %v1597_v37  ;;  %v1691_v50 = vld [vmem:[#allocation2 + $0xf48] sm:$0xff]  ;;  %v1661_v51 = vld [vmem:[#allocation2 + $0xe58] sm:$0xff] }
 0x11c   :  { %1781 = vmatprep.mubr.f32.mxu0 %v3545_v41  ;;  %1852 = vmatprep.mubr.f32.mxu1 %v3545_v41  ;;  %v59_v26 = vpop.permute.xlu1 %58  ;;  %v1693_v52 = vld [vmem:[#allocation2 + $0xf58] sm:$0xff] }
 0x11d   :  { %vm60_vm4 = vcmp.eq.s32.totalorder %v59_v26, 1  ;;  %v1563_v26 = vld [vmem:[#allocation2 + $0xb48] sm:$0xff]  ;;  %v1697_v36 = vld [vmem:[#allocation2 + $0xf78] sm:$0xff] }
 0x11e   :  { %3227 = vmatpush1.bf16.msra.mxu0 %v3226_v7  ;;  %3243 = vmatpush1.bf16.msra.mxu1 %v3242_v8  ;;  %v3648_v42 = vsel %vm60_vm4, %v3490_v32, 0.0  ;;  %v3262_v7 = vpack.c.bf16 %v1622_v58, %v1590_v57  ;;  %v3278_v8 = vpack.c.bf16 %v1624_v1, %v1592_v63  ;;  %v3288_v31 = vpack.c.bf16 %v1563_v26, %v1531_v25  ;;  %v1471_v63 = vld [vmem:[#allocation2 + $0x868] sm:$0xff]  ;;  %v1601_v25 = vld [vmem:[#allocation2 + $0xc78] sm:$0xff] }
 0x11f   :  { %3229 = vmatprep.subr.bf16.mxu0 %v3228_v11  ;;  %3245 = vmatprep.subr.bf16.mxu1 %v3244_v12  ;;  %v3264_v11 = vpack.c.bf16 %v1687_v4, %v1655_v3  ;;  %v3280_v12 = vpack.c.bf16 %v1689_v6, %v1657_v5  ;;  %v3304_v32 = vpack.c.bf16 %v1565_v28, %v1533_v27  ;;  %v1503_v1 = vld [vmem:[#allocation2 + $0x968] sm:$0xff]  ;;  %v1473_v3 = vld [vmem:[#allocation2 + $0x878] sm:$0xff] }
 0x120   :  { %v3296_v57 = vpack.c.bf16 %v1691_v50, %v1659_v49  ;;  %v3312_v58 = vpack.c.bf16 %v1693_v52, %v1661_v51  ;;  %v1505_v4 = vld [vmem:[#allocation2 + $0x978] sm:$0xff] }
 0x121   :  { %v1633_v26 = vld [vmem:[#allocation2 + $0xd78] sm:$0xff] }
 0x122   :  { %3231 = vmatpush1.bf16.msra.mxu0 %v3230_v23  ;;  %3247 = vmatpush1.bf16.msra.mxu1 %v3246_v19  ;;  %v3266_v23 = vpack.c.bf16 %v1686_v10, %v1654_v9  ;;  %v3282_v19 = vpack.c.bf16 %v1688_v14, %v1656_v13  ;;  %v3316_v9 = vpack.c.bf16 %v1503_v1, %v1471_v63  ;;  %v1535_v13 = vld [vmem:[#allocation2 + $0xa68] sm:$0xff]  ;;  %v1477_v49 = vld [vmem:[#allocation2 + $0x898] sm:$0xff] }
 0x123   :  { %3233 = vmatprep.subr.bf16.mxu0 %v3232_v21  ;;  %3249 = vmatprep.subr.bf16.mxu1 %v3248_v22  ;;  %v3284_v21 = vpack.c.bf16 %v1499_v16, %v1467_v15  ;;  %v3300_v22 = vpack.c.bf16 %v1501_v18, %v1469_v17  ;;  %v3332_v10 = vpack.c.bf16 %v1505_v4, %v1473_v3  ;;  %v1567_v14 = vld [vmem:[#allocation2 + $0xb68] sm:$0xff]  ;;  %v1537_v15 = vld [vmem:[#allocation2 + $0xa78] sm:$0xff] }
 0x124   :  { %v1569_v16 = vld [vmem:[#allocation2 + $0xb78] sm:$0xff]  ;;  %v3320_v2 = vpack.c.bf16 %v1567_v14, %v1535_v13 }
 0x125   :  { %v3336_v20 = vpack.c.bf16 %v1569_v16, %v1537_v15  ;;  %v1509_v50 = vld [vmem:[#allocation2 + $0x998] sm:$0xff] }
 0x126   :  { %3235 = vmatpush1.bf16.msra.mxu0 %v3234_v62  ;;  %3251 = vmatpush1.bf16.msra.mxu1 %v3250_v29  ;;  %v3302_v62 = vpack.c.bf16 %v1500_v24, %v1468_v0  ;;  %v1530_v29 = vld [vmem:[#allocation2 + $0xa40] sm:$0xff]  ;;  %v1599_v0 = vld [vmem:[#allocation2 + $0xc68] sm:$0xff]  ;;  %v1541_v63 = vld [vmem:[#allocation2 + $0xa98] sm:$0xff] }
 0x127   :  { %3253 = vmatprep.subr.bf16.mxu0 %v3252_v33  ;;  %3269 = vmatprep.subr.bf16.mxu1 %v3268_v34  ;;  %v1532_v33 = vld [vmem:[#allocation2 + $0xa50] sm:$0xff]  ;;  %v3290_v39 = vpack.c.bf16 %v1562_v30, %v1530_v29  ;;  %v1631_v24 = vld [vmem:[#allocation2 + $0xd68] sm:$0xff]  ;;  %v3340_v30 = vpack.c.bf16 %v1633_v26, %v1601_v25  ;;  %v1573_v1 = vld [vmem:[#allocation2 + $0xb98] sm:$0xff] }
 0x128   :  { %v1564_v34 = vld [vmem:[#allocation2 + $0xb50] sm:$0xff]  ;;  %v3324_v29 = vpack.c.bf16 %v1631_v24, %v1599_v0  ;;  %v1605_v13 = vld [vmem:[#allocation2 + $0xc98] sm:$0xff] }
 0x129   :  { %2948 = vmatmul.mubr.msk.f32.vlgmr.msra.gmra.mrb[16].mxu0 %vm318_vm3, %v3648_v42  ;;  %2949 = vmatmul.mubr.msk.f32.vlgmr.msra.gmra.mrb[16].mxu1 %vm318_vm3, %v3648_v42  ;;  %v3306_v40 = vpack.c.bf16 %v1564_v34, %v1532_v33  ;;  %v1663_v33 = vld [vmem:[#allocation2 + $0xe68] sm:$0xff]  ;;  %v1637_v14 = vld [vmem:[#allocation2 + $0xd98] sm:$0xff] }
 0x12a   :  { %3255 = vmatpush1.bf16.msra.mxu0 %v3254_v43  ;;  %3271 = vmatpush1.bf16.msra.mxu1 %v3270_v44  ;;  %v1594_v43 = vld [vmem:[#allocation2 + $0xc40] sm:$0xff]  ;;  %v1695_v34 = vld [vmem:[#allocation2 + $0xf68] sm:$0xff]  ;;  %v1669_v0 = vld [vmem:[#allocation2 + $0xe98] sm:$0xff] }
 0x12b   :  { %3257 = vmatprep.subr.bf16.mxu0 %v3256_v47  ;;  %3273 = vmatprep.subr.bf16.mxu1 %v3272_v48  ;;  %v1626_v44 = vld [vmem:[#allocation2 + $0xd40] sm:$0xff]  ;;  %v1596_v47 = vld [vmem:[#allocation2 + $0xc50] sm:$0xff]  ;;  %v1701_v24 = vld [vmem:[#allocation2 + $0xf98] sm:$0xff] }
 0x12c   :  { %1923 = vmatprep.mubr.f32.mxu0 %v3545_v41  ;;  %1994 = vmatprep.mubr.f32.mxu1 %v3545_v41  ;;  %v1628_v48 = vld [vmem:[#allocation2 + $0xd50] sm:$0xff]  ;;  %v3294_v53 = vpack.c.bf16 %v1626_v44, %v1594_v43  ;;  %v3328_v43 = vpack.c.bf16 %v1695_v34, %v1663_v33  ;;  %v3344_v44 = vpack.c.bf16 %v1697_v36, %v1665_v35  ;;  %v1481_v33 = vld [vmem:[#allocation2 + $0x8b8] sm:$0xff] }
 0x12d   :  { %v3310_v54 = vpack.c.bf16 %v1628_v48, %v1596_v47  ;;  %v1475_v47 = vld [vmem:[#allocation2 + $0x888] sm:$0xff]  ;;  %v1513_v34 = vld [vmem:[#allocation2 + $0x9b8] sm:$0xff] }
 0x12e   :  { %3259 = vmatpush1.bf16.msra.mxu0 %v3258_v55  ;;  %3275 = vmatpush1.bf16.msra.mxu1 %v3274_v56  ;;  %v1658_v55 = vld [vmem:[#allocation2 + $0xe40] sm:$0xff]  ;;  %v1507_v48 = vld [vmem:[#allocation2 + $0x988] sm:$0xff] }
 0x12f   :  { %3261 = vmatprep.subr.bf16.mxu0 %v3260_v59  ;;  %3277 = vmatprep.subr.bf16.mxu1 %v3276_v60  ;;  %v1690_v56 = vld [vmem:[#allocation2 + $0xf40] sm:$0xff]  ;;  %v1660_v59 = vld [vmem:[#allocation2 + $0xe50] sm:$0xff] }
 0x130   :  { %v1692_v60 = vld [vmem:[#allocation2 + $0xf50] sm:$0xff]  ;;  %v3298_v5 = vpack.c.bf16 %v1690_v56, %v1658_v55  ;;  %v3348_v55 = vpack.c.bf16 %v1507_v48, %v1475_v47  ;;  %v3364_v56 = vpack.c.bf16 %v1509_v50, %v1477_v49  ;;  %v1545_v47 = vld [vmem:[#allocation2 + $0xab8] sm:$0xff] }
 0x131   :  { %v3314_v6 = vpack.c.bf16 %v1692_v60, %v1660_v59  ;;  %v1539_v59 = vld [vmem:[#allocation2 + $0xa88] sm:$0xff]  ;;  %v1577_v48 = vld [vmem:[#allocation2 + $0xbb8] sm:$0xff] }
 0x132   :  { %3263 = vmatpush1.bf16.msra.mxu0 %v3262_v7  ;;  %3279 = vmatpush1.bf16.msra.mxu1 %v3278_v8  ;;  %v1470_v7 = vld [vmem:[#allocation2 + $0x860] sm:$0xff]  ;;  %v1571_v60 = vld [vmem:[#allocation2 + $0xb88] sm:$0xff] }
 0x133   :  { %3265 = vmatprep.subr.bf16.mxu0 %v3264_v11  ;;  %3281 = vmatprep.subr.bf16.mxu1 %v3280_v12  ;;  %v1502_v8 = vld [vmem:[#allocation2 + $0x960] sm:$0xff]  ;;  %v1472_v11 = vld [vmem:[#allocation2 + $0x870] sm:$0xff] }
 0x134   :  { %v1504_v12 = vld [vmem:[#allocation2 + $0x970] sm:$0xff]  ;;  %v3318_v17 = vpack.c.bf16 %v1502_v8, %v1470_v7  ;;  %v3352_v7 = vpack.c.bf16 %v1571_v60, %v1539_v59  ;;  %v3368_v8 = vpack.c.bf16 %v1573_v1, %v1541_v63  ;;  %v1609_v59 = vld [vmem:[#allocation2 + $0xcb8] sm:$0xff] }
 0x135   :  { %v3334_v18 = vpack.c.bf16 %v1504_v12, %v1472_v11  ;;  %v1603_v11 = vld [vmem:[#allocation2 + $0xc88] sm:$0xff]  ;;  %v1641_v60 = vld [vmem:[#allocation2 + $0xdb8] sm:$0xff] }
 0x136   :  { %3267 = vmatpush1.bf16.msra.mxu0 %v3266_v23  ;;  %3283 = vmatpush1.bf16.msra.mxu1 %v3282_v19  ;;  %v1534_v23 = vld [vmem:[#allocation2 + $0xa60] sm:$0xff]  ;;  %v1635_v12 = vld [vmem:[#allocation2 + $0xd88] sm:$0xff] }
 0x137   :  { %3285 = vmatprep.subr.bf16.mxu0 %v3284_v21  ;;  %3301 = vmatprep.subr.bf16.mxu1 %v3300_v22  ;;  %v1566_v19 = vld [vmem:[#allocation2 + $0xb60] sm:$0xff]  ;;  %v1536_v21 = vld [vmem:[#allocation2 + $0xa70] sm:$0xff] }
 0x138   :  { %v1568_v22 = vld [vmem:[#allocation2 + $0xb70] sm:$0xff]  ;;  %v3322_v27 = vpack.c.bf16 %v1566_v19, %v1534_v23  ;;  %v3356_v23 = vpack.c.bf16 %v1635_v12, %v1603_v11  ;;  %v3372_v19 = vpack.c.bf16 %v1637_v14, %v1605_v13  ;;  %v1673_v11 = vld [vmem:[#allocation2 + $0xeb8] sm:$0xff] }
 0x139   :  { %2950 = vmatmul.mubr.msk.f32.vlgmr.msra.gmra.mrb[18].mxu0 %vm318_vm3, %v3648_v42  ;;  %2951 = vmatmul.mubr.msk.f32.vlgmr.msra.gmra.mrb[18].mxu1 %vm318_vm3, %v3648_v42  ;;  %v3338_v28 = vpack.c.bf16 %v1568_v22, %v1536_v21  ;;  %v1667_v21 = vld [vmem:[#allocation2 + $0xe88] sm:$0xff]  ;;  %v1705_v12 = vld [vmem:[#allocation2 + $0xfb8] sm:$0xff] }
 0x13a   :  { %3287 = vmatpush1.bf16.msra.mxu0 %v3286_v61  ;;  %3303 = vmatpush1.bf16.msra.mxu1 %v3302_v62  ;;  %v1598_v61 = vld [vmem:[#allocation2 + $0xc60] sm:$0xff]  ;;  %v1699_v22 = vld [vmem:[#allocation2 + $0xf88] sm:$0xff] }
 0x13b   :  { %3289 = vmatprep.subr.bf16.mxu0 %v3288_v31  ;;  %3305 = vmatprep.subr.bf16.mxu1 %v3304_v32  ;;  %v1630_v62 = vld [vmem:[#allocation2 + $0xd60] sm:$0xff]  ;;  %v1600_v31 = vld [vmem:[#allocation2 + $0xc70] sm:$0xff] }
 0x13c   :  { %2065 = vmatprep.mubr.f32.mxu0 %v3545_v41  ;;  %2136 = vmatprep.mubr.f32.mxu1 %v3545_v41  ;;  %v1632_v32 = vld [vmem:[#allocation2 + $0xd70] sm:$0xff]  ;;  %v3326_v37 = vpack.c.bf16 %v1630_v62, %v1598_v61  ;;  %v3360_v61 = vpack.c.bf16 %v1699_v22, %v1667_v21  ;;  %v3376_v62 = vpack.c.bf16 %v1701_v24, %v1669_v0  ;;  %v1485_v21 = vld [vmem:[#allocation2 + $0x8d8] sm:$0xff] }
 0x13d   :  { %v3342_v38 = vpack.c.bf16 %v1632_v32, %v1600_v31  ;;  %v1479_v31 = vld [vmem:[#allocation2 + $0x8a8] sm:$0xff]  ;;  %v1517_v22 = vld [vmem:[#allocation2 + $0x9d8] sm:$0xff] }
 0x13e   :  { %3291 = vmatpush1.bf16.msra.mxu0 %v3290_v39  ;;  %3307 = vmatpush1.bf16.msra.mxu1 %v3306_v40  ;;  %v1662_v39 = vld [vmem:[#allocation2 + $0xe60] sm:$0xff]  ;;  %v1511_v32 = vld [vmem:[#allocation2 + $0x9a8] sm:$0xff] }
 0x13f   :  { %3293 = vmatprep.subr.bf16.mxu0 %v3292_v45  ;;  %3309 = vmatprep.subr.bf16.mxu1 %v3308_v46  ;;  %v1694_v40 = vld [vmem:[#allocation2 + $0xf60] sm:$0xff]  ;;  %v1664_v45 = vld [vmem:[#allocation2 + $0xe70] sm:$0xff] }
 0x140   :  { %v1696_v46 = vld [vmem:[#allocation2 + $0xf70] sm:$0xff]  ;;  %v3330_v51 = vpack.c.bf16 %v1694_v40, %v1662_v39  ;;  %v3380_v39 = vpack.c.bf16 %v1511_v32, %v1479_v31  ;;  %v3396_v40 = vpack.c.bf16 %v1513_v34, %v1481_v33  ;;  %v1549_v31 = vld [vmem:[#allocation2 + $0xad8] sm:$0xff] }
 0x141   :  { %v3346_v52 = vpack.c.bf16 %v1696_v46, %v1664_v45  ;;  %v1543_v45 = vld [vmem:[#allocation2 + $0xaa8] sm:$0xff]  ;;  %v1581_v32 = vld [vmem:[#allocation2 + $0xbd8] sm:$0xff] }
 0x142   :  { %3295 = vmatpush1.bf16.msra.mxu0 %v3294_v53  ;;  %3311 = vmatpush1.bf16.msra.mxu1 %v3310_v54  ;;  %v1474_v53 = vld [vmem:[#allocation2 + $0x880] sm:$0xff]  ;;  %v1575_v46 = vld [vmem:[#allocation2 + $0xba8] sm:$0xff] }
 0x143   :  { %3297 = vmatprep.subr.bf16.mxu0 %v3296_v57  ;;  %3313 = vmatprep.subr.bf16.mxu1 %v3312_v58  ;;  %v1506_v54 = vld [vmem:[#allocation2 + $0x980] sm:$0xff]  ;;  %v1476_v57 = vld [vmem:[#allocation2 + $0x890] sm:$0xff] }
 0x144   :  { %v1508_v58 = vld [vmem:[#allocation2 + $0x990] sm:$0xff]  ;;  %v3350_v3 = vpack.c.bf16 %v1506_v54, %v1474_v53  ;;  %v3384_v53 = vpack.c.bf16 %v1575_v46, %v1543_v45  ;;  %v3400_v54 = vpack.c.bf16 %v1577_v48, %v1545_v47  ;;  %v1613_v45 = vld [vmem:[#allocation2 + $0xcd8] sm:$0xff] }
 0x145   :  { %v3366_v4 = vpack.c.bf16 %v1508_v58, %v1476_v57  ;;  %v1607_v57 = vld [vmem:[#allocation2 + $0xca8] sm:$0xff]  ;;  %v1645_v46 = vld [vmem:[#allocation2 + $0xdd8] sm:$0xff] }
 0x146   :  { %3299 = vmatpush1.bf16.msra.mxu0 %v3298_v5  ;;  %3315 = vmatpush1.bf16.msra.mxu1 %v3314_v6  ;;  %v1538_v5 = vld [vmem:[#allocation2 + $0xa80] sm:$0xff]  ;;  %v1639_v58 = vld [vmem:[#allocation2 + $0xda8] sm:$0xff] }
 0x147   :  { %3317 = vmatprep.subr.bf16.mxu0 %v3316_v9  ;;  %3333 = vmatprep.subr.bf16.mxu1 %v3332_v10  ;;  %v1570_v6 = vld [vmem:[#allocation2 + $0xb80] sm:$0xff]  ;;  %v1540_v9 = vld [vmem:[#allocation2 + $0xa90] sm:$0xff] }
 0x148   :  { %v1572_v10 = vld [vmem:[#allocation2 + $0xb90] sm:$0xff]  ;;  %v3354_v15 = vpack.c.bf16 %v1570_v6, %v1538_v5  ;;  %v3388_v5 = vpack.c.bf16 %v1639_v58, %v1607_v57  ;;  %v3404_v6 = vpack.c.bf16 %v1641_v60, %v1609_v59  ;;  %v1707_v58 = vld [vmem:[#allocation2 + $0xfc8] sm:$0xff]  ;;  %v1677_v59 = vld [vmem:[#allocation2 + $0xed8] sm:$0xff] }
 0x149   :  { %2952 = vmatmul.mubr.msk.f32.vlgmr.msra.gmra.mrb[20].mxu0 %vm318_vm3, %v3648_v42  ;;  %2953 = vmatmul.mubr.msk.f32.vlgmr.msra.gmra.mrb[20].mxu1 %vm318_vm3, %v3648_v42  ;;  %v3370_v16 = vpack.c.bf16 %v1572_v10, %v1540_v9  ;;  %v1671_v9 = vld [vmem:[#allocation2 + $0xea8] sm:$0xff]  ;;  %v1709_v60 = vld [vmem:[#allocation2 + $0xfd8] sm:$0xff] }
 0x14a   :  { %3319 = vmatpush1.bf16.msra.mxu0 %v3318_v17  ;;  %3335 = vmatpush1.bf16.msra.mxu1 %v3334_v18  ;;  %v1602_v17 = vld [vmem:[#allocation2 + $0xc80] sm:$0xff]  ;;  %v1703_v10 = vld [vmem:[#allocation2 + $0xfa8] sm:$0xff] }
 0x14b   :  { %3321 = vmatprep.subr.bf16.mxu0 %v3320_v2  ;;  %3337 = vmatprep.subr.bf16.mxu1 %v3336_v20  ;;  %v1634_v18 = vld [vmem:[#allocation2 + $0xd80] sm:$0xff]  ;;  %v1604_v2 = vld [vmem:[#allocation2 + $0xc90] sm:$0xff] }
 0x14c   :  { %2207 = vmatprep.mubr.f32.mxu0 %v3545_v41  ;;  %2278 = vmatprep.mubr.f32.mxu1 %v3545_v41  ;;  %v1636_v20 = vld [vmem:[#allocation2 + $0xd90] sm:$0xff]  ;;  %v3358_v25 = vpack.c.bf16 %v1634_v18, %v1602_v17  ;;  %v3392_v17 = vpack.c.bf16 %v1703_v10, %v1671_v9  ;;  %v3408_v18 = vpack.c.bf16 %v1705_v12, %v1673_v11  ;;  %v1487_v11 = vld [vmem:[#allocation2 + $0x8e8] sm:$0xff] }
 0x14d   :  { %v3374_v26 = vpack.c.bf16 %v1636_v20, %v1604_v2  ;;  %v1483_v2 = vld [vmem:[#allocation2 + $0x8c8] sm:$0xff]  ;;  %v1676_v9 = vld [vmem:[#allocation2 + $0xed0] sm:$0xff] }
 0x14e   :  { %3323 = vmatpush1.bf16.msra.mxu0 %v3322_v27  ;;  %3339 = vmatpush1.bf16.msra.mxu1 %v3338_v28  ;;  %v1666_v27 = vld [vmem:[#allocation2 + $0xe80] sm:$0xff]  ;;  %v1515_v20 = vld [vmem:[#allocation2 + $0x9c8] sm:$0xff]  ;;  %v1708_v10 = vld [vmem:[#allocation2 + $0xfd0] sm:$0xff] }
 0x14f   :  { %3325 = vmatprep.subr.bf16.mxu0 %v3324_v29  ;;  %3341 = vmatprep.subr.bf16.mxu1 %v3340_v30  ;;  %v1698_v28 = vld [vmem:[#allocation2 + $0xf80] sm:$0xff]  ;;  %v1668_v29 = vld [vmem:[#allocation2 + $0xe90] sm:$0xff]  ;;  %v1519_v12 = vld [vmem:[#allocation2 + $0x9e8] sm:$0xff] }
 0x150   :  { %v1700_v30 = vld [vmem:[#allocation2 + $0xf90] sm:$0xff]  ;;  %v3362_v35 = vpack.c.bf16 %v1698_v28, %v1666_v27  ;;  %v3412_v27 = vpack.c.bf16 %v1515_v20, %v1483_v2  ;;  %v3428_v28 = vpack.c.bf16 %v1517_v22, %v1485_v21  ;;  %v1551_v21 = vld [vmem:[#allocation2 + $0xae8] sm:$0xff] }
 0x151   :  { %v3378_v36 = vpack.c.bf16 %v1700_v30, %v1668_v29  ;;  %v1547_v29 = vld [vmem:[#allocation2 + $0xac8] sm:$0xff]  ;;  %v1488_v2 = vld [vmem:[#allocation2 + $0x8f0] sm:$0xff] }
 0x152   :  { %3327 = vmatpush1.bf16.msra.mxu0 %v3326_v37  ;;  %3343 = vmatpush1.bf16.msra.mxu1 %v3342_v38  ;;  %v1478_v37 = vld [vmem:[#allocation2 + $0x8a0] sm:$0xff]  ;;  %v1579_v30 = vld [vmem:[#allocation2 + $0xbc8] sm:$0xff]  ;;  %v1520_v20 = vld [vmem:[#allocation2 + $0x9f0] sm:$0xff] }
 0x153   :  { %3329 = vmatprep.subr.bf16.mxu0 %v3328_v43  ;;  %3345 = vmatprep.subr.bf16.mxu1 %v3344_v44  ;;  %v1510_v38 = vld [vmem:[#allocation2 + $0x9a0] sm:$0xff]  ;;  %v1480_v43 = vld [vmem:[#allocation2 + $0x8b0] sm:$0xff]  ;;  %v1583_v22 = vld [vmem:[#allocation2 + $0xbe8] sm:$0xff] }
 0x154   :  { %v1512_v44 = vld [vmem:[#allocation2 + $0x9b0] sm:$0xff]  ;;  %v3382_v49 = vpack.c.bf16 %v1510_v38, %v1478_v37  ;;  %v3416_v37 = vpack.c.bf16 %v1579_v30, %v1547_v29  ;;  %v3432_v38 = vpack.c.bf16 %v1581_v32, %v1549_v31  ;;  %v1615_v31 = vld [vmem:[#allocation2 + $0xce8] sm:$0xff] }
 0x155   :  { %v3398_v50 = vpack.c.bf16 %v1512_v44, %v1480_v43  ;;  %v1611_v43 = vld [vmem:[#allocation2 + $0xcc8] sm:$0xff]  ;;  %v1552_v29 = vld [vmem:[#allocation2 + $0xaf0] sm:$0xff] }
 0x156   :  { %3331 = vmatpush1.bf16.msra.mxu0 %v3330_v51  ;;  %3347 = vmatpush1.bf16.msra.mxu1 %v3346_v52  ;;  %v1542_v51 = vld [vmem:[#allocation2 + $0xaa0] sm:$0xff]  ;;  %v1643_v44 = vld [vmem:[#allocation2 + $0xdc8] sm:$0xff]  ;;  %v1584_v30 = vld [vmem:[#allocation2 + $0xbf0] sm:$0xff] }
 0x157   :  { %3349 = vmatprep.subr.bf16.mxu0 %v3348_v55  ;;  %3365 = vmatprep.subr.bf16.mxu1 %v3364_v56  ;;  %v1574_v52 = vld [vmem:[#allocation2 + $0xba0] sm:$0xff]  ;;  %v1544_v55 = vld [vmem:[#allocation2 + $0xab0] sm:$0xff]  ;;  %v1647_v32 = vld [vmem:[#allocation2 + $0xde8] sm:$0xff] }
 0x158   :  { %v1576_v56 = vld [vmem:[#allocation2 + $0xbb0] sm:$0xff]  ;;  %v3386_v63 = vpack.c.bf16 %v1574_v52, %v1542_v51  ;;  %v3420_v51 = vpack.c.bf16 %v1643_v44, %v1611_v43  ;;  %v3436_v52 = vpack.c.bf16 %v1645_v46, %v1613_v45  ;;  %v1679_v45 = vld [vmem:[#allocation2 + $0xee8] sm:$0xff] }
 0x159   :  { %2954 = vmatmul.mubr.msk.f32.vlgmr.msra.gmra.mrb[22].mxu0 %vm318_vm3, %v3648_v42  ;;  %2955 = vmatmul.mubr.msk.f32.vlgmr.msra.gmra.mrb[22].mxu1 %vm318_vm3, %v3648_v42  ;;  %v3402_v1 = vpack.c.bf16 %v1576_v56, %v1544_v55  ;;  %v1675_v55 = vld [vmem:[#allocation2 + $0xec8] sm:$0xff]  ;;  %v1616_v43 = vld [vmem:[#allocation2 + $0xcf0] sm:$0xff] }
 0x15a   :  { %3351 = vmatpush1.bf16.msra.mxu0 %v3350_v3  ;;  %3367 = vmatpush1.bf16.msra.mxu1 %v3366_v4  ;;  %v1606_v3 = vld [vmem:[#allocation2 + $0xca0] sm:$0xff]  ;;  %v1648_v44 = vld [vmem:[#allocation2 + $0xdf0] sm:$0xff] }
 0x15b   :  { %3353 = vmatprep.subr.bf16.mxu0 %v3352_v7  ;;  %3369 = vmatprep.subr.bf16.mxu1 %v3368_v8  ;;  %v1638_v4 = vld [vmem:[#allocation2 + $0xda0] sm:$0xff]  ;;  %v1608_v7 = vld [vmem:[#allocation2 + $0xcb0] sm:$0xff] }
 0x15c   :  { %2349 = vmatprep.mubr.f32.mxu0 %v3545_v41  ;;  %2420 = vmatprep.mubr.f32.mxu1 %v3545_v41  ;;  %v1640_v8 = vld [vmem:[#allocation2 + $0xdb0] sm:$0xff]  ;;  %v3390_v13 = vpack.c.bf16 %v1638_v4, %v1606_v3 }
 0x15d   :  { %v3406_v14 = vpack.c.bf16 %v1640_v8, %v1608_v7  ;;  %v3424_v7 = vpack.c.bf16 %v1707_v58, %v1675_v55  ;;  %v3440_v8 = vpack.c.bf16 %v1709_v60, %v1677_v59  ;;  %v1678_v55 = vld [vmem:[#allocation2 + $0xee0] sm:$0xff] }
 0x15e   :  { %3355 = vmatpush1.bf16.msra.mxu0 %v3354_v15  ;;  %3371 = vmatpush1.bf16.msra.mxu1 %v3370_v16  ;;  %v1670_v15 = vld [vmem:[#allocation2 + $0xea0] sm:$0xff] }
 0x15f   :  { %3357 = vmatprep.subr.bf16.mxu0 %v3356_v23  ;;  %3373 = vmatprep.subr.bf16.mxu1 %v3372_v19  ;;  %v1702_v16 = vld [vmem:[#allocation2 + $0xfa0] sm:$0xff]  ;;  %v1672_v23 = vld [vmem:[#allocation2 + $0xeb0] sm:$0xff] }
 0x160   :  { %v1704_v19 = vld [vmem:[#allocation2 + $0xfb0] sm:$0xff]  ;;  %v3394_v0 = vpack.c.bf16 %v1702_v16, %v1670_v15  ;;  %v3442_v16 = vpack.c.bf16 %v1708_v10, %v1676_v9  ;;  %v1710_v60 = vld [vmem:[#allocation2 + $0xfe0] sm:$0xff] }
 0x161   :  { %v3410_v24 = vpack.c.bf16 %v1704_v19, %v1672_v23  ;;  %v3444_v23 = vpack.c.bf16 %v1519_v12, %v1487_v11 }
 0x162   :  { %3359 = vmatpush1.bf16.msra.mxu0 %v3358_v25  ;;  %3375 = vmatpush1.bf16.msra.mxu1 %v3374_v26  ;;  %v1482_v25 = vld [vmem:[#allocation2 + $0x8c0] sm:$0xff] }
 0x163   :  { %3361 = vmatprep.subr.bf16.mxu0 %v3360_v61  ;;  %3377 = vmatprep.subr.bf16.mxu1 %v3376_v62  ;;  %v1514_v26 = vld [vmem:[#allocation2 + $0x9c0] sm:$0xff]  ;;  %v1484_v61 = vld [vmem:[#allocation2 + $0x8d0] sm:$0xff] }
 0x164   :  { %v1516_v62 = vld [vmem:[#allocation2 + $0x9d0] sm:$0xff]  ;;  %v3414_v33 = vpack.c.bf16 %v1514_v26, %v1482_v25  ;;  %v3462_v26 = vpack.c.bf16 %v1520_v20, %v1488_v2 }
 0x165   :  { %v3430_v34 = vpack.c.bf16 %v1516_v62, %v1484_v61  ;;  %v3448_v61 = vpack.c.bf16 %v1583_v22, %v1551_v21 }
 0x166   :  { %3363 = vmatpush1.bf16.msra.mxu0 %v3362_v35  ;;  %3379 = vmatpush1.bf16.msra.mxu1 %v3378_v36  ;;  %v1546_v35 = vld [vmem:[#allocation2 + $0xac0] sm:$0xff] }
 0x167   :  { %3381 = vmatprep.subr.bf16.mxu0 %v3380_v39  ;;  %3397 = vmatprep.subr.bf16.mxu1 %v3396_v40  ;;  %v1578_v36 = vld [vmem:[#allocation2 + $0xbc0] sm:$0xff]  ;;  %v1548_v39 = vld [vmem:[#allocation2 + $0xad0] sm:$0xff] }
 0x168   :  { %v1580_v40 = vld [vmem:[#allocation2 + $0xbd0] sm:$0xff]  ;;  %v3418_v47 = vpack.c.bf16 %v1578_v36, %v1546_v35  ;;  %v3466_v36 = vpack.c.bf16 %v1584_v30, %v1552_v29 }
 0x169   :  { %2956 = vmatmul.mubr.msk.f32.vlgmr.msra.gmra.mrb[24].mxu0 %vm318_vm3, %v3648_v42  ;;  %2957 = vmatmul.mubr.msk.f32.vlgmr.msra.gmra.mrb[24].mxu1 %vm318_vm3, %v3648_v42  ;;  %v3434_v48 = vpack.c.bf16 %v1580_v40, %v1548_v39  ;;  %v3452_v39 = vpack.c.bf16 %v1647_v32, %v1615_v31 }
 0x16a   :  { %3383 = vmatpush1.bf16.msra.mxu0 %v3382_v49  ;;  %3399 = vmatpush1.bf16.msra.mxu1 %v3398_v50  ;;  %v1610_v49 = vld [vmem:[#allocation2 + $0xcc0] sm:$0xff] }
 0x16b   :  { %3385 = vmatprep.subr.bf16.mxu0 %v3384_v53  ;;  %3401 = vmatprep.subr.bf16.mxu1 %v3400_v54  ;;  %v1642_v50 = vld [vmem:[#allocation2 + $0xdc0] sm:$0xff]  ;;  %v1612_v53 = vld [vmem:[#allocation2 + $0xcd0] sm:$0xff] }
 0x16c   :  { %2491 = vmatprep.mubr.f32.mxu0 %v3545_v41  ;;  %2562 = vmatprep.mubr.f32.mxu1 %v3545_v41  ;;  %v1644_v54 = vld [vmem:[#allocation2 + $0xdd0] sm:$0xff]  ;;  %v3422_v3 = vpack.c.bf16 %v1642_v50, %v1610_v49  ;;  %v1681_v49 = vld [vmem:[#allocation2 + $0xef8] sm:$0xff] }
 0x16d   :  { %v3438_v4 = vpack.c.bf16 %v1644_v54, %v1612_v53  ;;  %v1713_v50 = vld [vmem:[#allocation2 + $0xff8] sm:$0xff]  ;;  %v3470_v54 = vpack.c.bf16 %v1648_v44, %v1616_v43 }
 0x16e   :  { %3387 = vmatpush1.bf16.msra.mxu0 %v3386_v63  ;;  %3403 = vmatpush1.bf16.msra.mxu1 %v3402_v1  ;;  %v3472_v59 = vpack.c.bf16 %v1713_v50, %v1681_v49 }
 0x16f   :  { %3389 = vmatprep.subr.bf16.mxu0 %v3388_v5  ;;  %3405 = vmatprep.subr.bf16.mxu1 %v3404_v6  ;;  %v1674_v5 = vld [vmem:[#allocation2 + $0xec0] sm:$0xff] }
 0x170   :  { %v1706_v6 = vld [vmem:[#allocation2 + $0xfc0] sm:$0xff] }
 0x171   :  { %v3426_v15 = vpack.c.bf16 %v1706_v6, %v1674_v5  ;;  %v3458_v5 = vpack.c.bf16 %v1710_v60, %v1678_v55 }
 0x172   :  { %3391 = vmatpush1.bf16.msra.mxu0 %v3390_v13  ;;  %3407 = vmatpush1.bf16.msra.mxu1 %v3406_v14  ;;  %v1489_v13 = vld [vmem:[#allocation2 + $0x8f8] sm:$0xff] }
 0x173   :  { %3393 = vmatprep.subr.bf16.mxu0 %v3392_v17  ;;  %3409 = vmatprep.subr.bf16.mxu1 %v3408_v18  ;;  %v1521_v14 = vld [vmem:[#allocation2 + $0x9f8] sm:$0xff]  ;;  %v1486_v17 = vld [vmem:[#allocation2 + $0x8e0] sm:$0xff] }
 0x174   :  { %v1518_v18 = vld [vmem:[#allocation2 + $0x9e0] sm:$0xff]  ;;  %v3460_v19 = vpack.c.bf16 %v1521_v14, %v1489_v13 }
 0x175   :  { %v3446_v25 = vpack.c.bf16 %v1518_v18, %v1486_v17 }
 0x176   :  { %3395 = vmatpush1.bf16.msra.mxu0 %v3394_v0  ;;  %3411 = vmatpush1.bf16.msra.mxu1 %v3410_v24  ;;  %v1553_v0 = vld [vmem:[#allocation2 + $0xaf8] sm:$0xff] }
 0x177   :  { %3413 = vmatprep.subr.bf16.mxu0 %v3412_v27  ;;  %3429 = vmatprep.subr.bf16.mxu1 %v3428_v28  ;;  %v1585_v24 = vld [vmem:[#allocation2 + $0xbf8] sm:$0xff]  ;;  %v1550_v27 = vld [vmem:[#allocation2 + $0xae0] sm:$0xff] }
 0x178   :  { %v1582_v28 = vld [vmem:[#allocation2 + $0xbe0] sm:$0xff]  ;;  %v3464_v62 = vpack.c.bf16 %v1585_v24, %v1553_v0 }
 0x179   :  { %2958 = vmatmul.mubr.msk.f32.vlgmr.msra.gmra.mrb[26].mxu0 %vm318_vm3, %v3648_v42  ;;  %2959 = vmatmul.mubr.msk.f32.vlgmr.msra.gmra.mrb[26].mxu1 %vm318_vm3, %v3648_v42  ;;  %v3450_v35 = vpack.c.bf16 %v1582_v28, %v1550_v27 }
 0x17a   :  { %3415 = vmatpush1.bf16.msra.mxu0 %v3414_v33  ;;  %3431 = vmatpush1.bf16.msra.mxu1 %v3430_v34  ;;  %v1617_v33 = vld [vmem:[#allocation2 + $0xcf8] sm:$0xff] }
 0x17b   :  { %3417 = vmatprep.subr.bf16.mxu0 %v3416_v37  ;;  %3433 = vmatprep.subr.bf16.mxu1 %v3432_v38  ;;  %v1649_v34 = vld [vmem:[#allocation2 + $0xdf8] sm:$0xff]  ;;  %v1614_v37 = vld [vmem:[#allocation2 + $0xce0] sm:$0xff] }
 0x17c   :  { %v3684_v56 = vpop.f32.mrb[0].mxu0  ;;  %v3686_v57 = vpop.f32.mrb[0].mxu1  ;;  %2633 = vmatprep.mubr.f32.mxu0 %v3545_v41  ;;  %2704 = vmatprep.mubr.f32.mxu1 %v3545_v41  ;;  %v1646_v38 = vld [vmem:[#allocation2 + $0xde0] sm:$0xff]  ;;  %v3468_v40 = vpack.c.bf16 %v1649_v34, %v1617_v33 }
 0x17d   :  { %v3690_v63 = vpop.f32.mrb[1].mxu0  ;;  %v3692_v1 = vpop.f32.mrb[1].mxu1  ;;  %v3454_v53 = vpack.c.bf16 %v1646_v38, %v1614_v37 }
 0x17e   :  { %3419 = vmatpush1.bf16.msra.mxu0 %v3418_v47  ;;  %3435 = vmatpush1.bf16.msra.mxu1 %v3434_v48  ;;  %v1711_v48 = vld [vmem:[#allocation2 + $0xfe8] sm:$0xff] }
 0x17f   :  { %3421 = vmatprep.subr.bf16.mxu0 %v3420_v51  ;;  %3437 = vmatprep.subr.bf16.mxu1 %v3436_v52  ;;  %v3456_v58 = vpack.c.bf16 %v1711_v48, %v1679_v45 }
 0x182   :  { %3423 = vmatpush1.bf16.msra.mxu0 %v3422_v3  ;;  %3439 = vmatpush1.bf16.msra.mxu1 %v3438_v4  ;;  %v1680_v3 = vld [vmem:[#allocation2 + $0xef0] sm:$0xff] }
 0x183   :  { %3425 = vmatprep.subr.bf16.mxu0 %v3424_v7  ;;  %3441 = vmatprep.subr.bf16.mxu1 %v3440_v8  ;;  %v1712_v4 = vld [vmem:[#allocation2 + $0xff0] sm:$0xff] }
 0x186   :  { %3427 = vmatpush1.bf16.msra.mxu0 %v3426_v15  ;;  %3443 = vmatpush1.bf16.msra.mxu1 %v3442_v16 }
 0x187   :  { %3445 = vmatprep.subr.bf16.mxu0 %v3444_v23  ;;  %3461 = vmatprep.subr.bf16.mxu1 %v3460_v19 }
 0x189   :  { %2960 = vmatmul.mubr.msk.f32.vlgmr.msra.gmra.mrb[28].mxu0 %vm318_vm3, %v3648_v42  ;;  %2961 = vmatmul.mubr.msk.f32.vlgmr.msra.gmra.mrb[28].mxu1 %vm318_vm3, %v3648_v42 }
 0x18a   :  { %3447 = vmatpush1.bf16.msra.mxu0 %v3446_v25  ;;  %3463 = vmatpush1.bf16.msra.mxu1 %v3462_v26 }
 0x18b   :  { %3449 = vmatprep.subr.bf16.mxu0 %v3448_v61  ;;  %3465 = vmatprep.subr.bf16.mxu1 %v3464_v62 }
 0x18c   :  { %v3698_v46 = vpop.f32.mrb[2].mxu0  ;;  %v3700_v47 = vpop.f32.mrb[2].mxu1  ;;  %2775 = vmatprep.mubr.f32.mxu0 %v3545_v41  ;;  %2846 = vmatprep.mubr.f32.mxu1 %v3545_v41  ;;  %v3474_v41 = vpack.c.bf16 %v1712_v4, %v1680_v3 }
 0x18d   :  { %v3704_v51 = vpop.f32.mrb[3].mxu0  ;;  %v3706_v52 = vpop.f32.mrb[3].mxu1 }
 0x18e   :  { %3451 = vmatpush1.bf16.msra.mxu0 %v3450_v35  ;;  %3467 = vmatpush1.bf16.msra.mxu1 %v3466_v36 }
 0x18f   :  { %3453 = vmatprep.subr.bf16.mxu0 %v3452_v39  ;;  %3469 = vmatprep.subr.bf16.mxu1 %v3468_v40 }
 0x192   :  { %3455 = vmatpush1.bf16.msra.mxu0 %v3454_v53  ;;  %3471 = vmatpush1.bf16.msra.mxu1 %v3470_v54 }
 0x193   :  { %3457 = vmatprep.subr.bf16.mxu0 %v3456_v58  ;;  %3473 = vmatprep.subr.bf16.mxu1 %v3472_v59 }
 0x196   :  { %3459 = vmatpush1.bf16.msra.mxu0 %v3458_v5  ;;  %3475 = vmatpush1.bf16.msra.mxu1 %v3474_v41 }
 0x199   :  { %2962 = vmatmul.mubr.msk.f32.vlgmr.msra.gmra.mrb[30].mxu0 %vm318_vm3, %v3648_v42  ;;  %2963 = vmatmul.mubr.msk.f32.vlgmr.msra.gmra.mrb[30].mxu1 %vm318_vm3, %v3648_v42 }
 0x19c   :  { %v672_v6 = vpop.f32.mrb[4].mxu0  ;;  %v743_v7 = vpop.f32.mrb[4].mxu1 }
 0x19d   :  { %v674_v8 = vpop.f32.mrb[5].mxu0  ;;  %v745_v9 = vpop.f32.mrb[5].mxu1 }
 0x1ac   :  { %v814_v10 = vpop.f32.mrb[6].mxu0  ;;  %v885_v11 = vpop.f32.mrb[6].mxu1 }
 0x1ad   :  { %v816_v12 = vpop.f32.mrb[7].mxu0  ;;  %v887_v13 = vpop.f32.mrb[7].mxu1 }
 0x1bc   :  { %v3712_v14 = vpop.f32.mrb[8].mxu0  ;;  %v3714_v15 = vpop.f32.mrb[8].mxu1 }
 0x1bd   :  { %v3716_v16 = vpop.f32.mrb[9].mxu0  ;;  %v3718_v17 = vpop.f32.mrb[9].mxu1 }
 0x1cc   :  { %v3720_v18 = vpop.f32.mrb[10].mxu0  ;;  %v3722_v23 = vpop.f32.mrb[10].mxu1 }
 0x1cd   :  { %v3724_v42 = vpop.f32.mrb[11].mxu0  ;;  %v3726_v19 = vpop.f32.mrb[11].mxu1 }
 0x1dc   :  { %v3728_v2 = vpop.f32.mrb[12].mxu0  ;;  %v3730_v20 = vpop.f32.mrb[12].mxu1 }
 0x1dd   :  { %v3732_v21 = vpop.f32.mrb[13].mxu0  ;;  %v3734_v22 = vpop.f32.mrb[13].mxu1 }
 0x1ec   :  { %v3736_v0 = vpop.f32.mrb[14].mxu0  ;;  %v3738_v24 = vpop.f32.mrb[14].mxu1 }
 0x1ed   :  { %v3740_v25 = vpop.f32.mrb[15].mxu0  ;;  %v3742_v26 = vpop.f32.mrb[15].mxu1 }
 0x1fc   :  { %v1783_v27 = vpop.f32.mrb[16].mxu0  ;;  %v1854_v28 = vpop.f32.mrb[16].mxu1 }
 0x1fd   :  { %v2853_v61 = vmul.f32 %v1783_v27, %v3684_v56  ;;  %v2855_v62 = vmul.f32 %v1854_v28, %v3686_v57  ;;  %v1785_v29 = vpop.f32.mrb[17].mxu0  ;;  %v1856_v30 = vpop.f32.mrb[17].mxu1 }
 0x1fe   :  { %v2854_v31 = vmul.f32 %v1785_v29, %v3690_v63  ;;  %v2856_v32 = vmul.f32 %v1856_v30, %v3692_v1 }
 0x1ff   :  { %2885 = vst [vmem:[#allocation5] sm:$0xff] %v2853_v61  ;;  %2887 = vst [vmem:[#allocation5 + $0x10] sm:$0xff] %v2855_v62 }
 0x200   :  { %2886 = vst [vmem:[#allocation5 + $0x8] sm:$0xff] %v2854_v31  ;;  %2888 = vst [vmem:[#allocation5 + $0x18] sm:$0xff] %v2856_v32 }
 0x20c   :  { %v1925_v33 = vpop.f32.mrb[18].mxu0  ;;  %v1996_v34 = vpop.f32.mrb[18].mxu1 }
 0x20d   :  { %v2857_v35 = vmul.f32 %v1925_v33, %v3698_v46  ;;  %v2859_v36 = vmul.f32 %v1996_v34, %v3700_v47  ;;  %v1927_v37 = vpop.f32.mrb[19].mxu0  ;;  %v1998_v56 = vpop.f32.mrb[19].mxu1 }
 0x20e   :  { %v2858_v57 = vmul.f32 %v1927_v37, %v3704_v51  ;;  %v2860_v38 = vmul.f32 %v1998_v56, %v3706_v52 }
 0x20f   :  { %2889 = vst [vmem:[#allocation5 + $0x20] sm:$0xff] %v2857_v35  ;;  %2891 = vst [vmem:[#allocation5 + $0x30] sm:$0xff] %v2859_v36 }
 0x210   :  { %2890 = vst [vmem:[#allocation5 + $0x28] sm:$0xff] %v2858_v57  ;;  %2892 = vst [vmem:[#allocation5 + $0x38] sm:$0xff] %v2860_v38 }
 0x21c   :  { %v2067_v63 = vpop.f32.mrb[20].mxu0  ;;  %v2138_v1 = vpop.f32.mrb[20].mxu1 }
 0x21d   :  { %v2861_v39 = vmul.f32 %v2067_v63, %v672_v6  ;;  %v2863_v40 = vmul.f32 %v2138_v1, %v743_v7  ;;  %v2069_v43 = vpop.f32.mrb[21].mxu0  ;;  %v2140_v44 = vpop.f32.mrb[21].mxu1 }
 0x21e   :  { %v2862_v45 = vmul.f32 %v2069_v43, %v674_v8  ;;  %v2864_v46 = vmul.f32 %v2140_v44, %v745_v9 }
 0x21f   :  { %2893 = vst [vmem:[#allocation5 + $0x40] sm:$0xff] %v2861_v39  ;;  %2895 = vst [vmem:[#allocation5 + $0x50] sm:$0xff] %v2863_v40 }
 0x220   :  { %2894 = vst [vmem:[#allocation5 + $0x48] sm:$0xff] %v2862_v45  ;;  %2896 = vst [vmem:[#allocation5 + $0x58] sm:$0xff] %v2864_v46 }
 0x22c   :  { %v2209_v47 = vpop.f32.mrb[22].mxu0  ;;  %v2280_v48 = vpop.f32.mrb[22].mxu1 }
 0x22d   :  { %v2865_v49 = vmul.f32 %v2209_v47, %v814_v10  ;;  %v2867_v50 = vmul.f32 %v2280_v48, %v885_v11  ;;  %v2211_v51 = vpop.f32.mrb[23].mxu0  ;;  %v2282_v52 = vpop.f32.mrb[23].mxu1 }
 0x22e   :  { %v2866_v53 = vmul.f32 %v2211_v51, %v816_v12  ;;  %v2868_v54 = vmul.f32 %v2282_v52, %v887_v13 }
 0x22f   :  { %2897 = vst [vmem:[#allocation5 + $0x60] sm:$0xff] %v2865_v49  ;;  %2899 = vst [vmem:[#allocation5 + $0x70] sm:$0xff] %v2867_v50 }
 0x230   :  { %2898 = vst [vmem:[#allocation5 + $0x68] sm:$0xff] %v2866_v53  ;;  %2900 = vst [vmem:[#allocation5 + $0x78] sm:$0xff] %v2868_v54 }
 0x23c   :  { %v2351_v55 = vpop.f32.mrb[24].mxu0  ;;  %v2422_v58 = vpop.f32.mrb[24].mxu1 }
 0x23d   :  { %v2869_v59 = vmul.f32 %v2351_v55, %v3712_v14  ;;  %v2871_v60 = vmul.f32 %v2422_v58, %v3714_v15  ;;  %v2353_v3 = vpop.f32.mrb[25].mxu0  ;;  %v2424_v4 = vpop.f32.mrb[25].mxu1 }
 0x23e   :  { %v2870_v5 = vmul.f32 %v2353_v3, %v3716_v16  ;;  %v2872_v41 = vmul.f32 %v2424_v4, %v3718_v17 }
 0x23f   :  { %2901 = vst [vmem:[#allocation5 + $0x80] sm:$0xff] %v2869_v59  ;;  %2903 = vst [vmem:[#allocation5 + $0x90] sm:$0xff] %v2871_v60 }
 0x240   :  { %2902 = vst [vmem:[#allocation5 + $0x88] sm:$0xff] %v2870_v5  ;;  %2904 = vst [vmem:[#allocation5 + $0x98] sm:$0xff] %v2872_v41 }
 0x24c   :  { %v2493_v6 = vpop.f32.mrb[26].mxu0  ;;  %v2564_v7 = vpop.f32.mrb[26].mxu1 }
 0x24d   :  { %v2873_v8 = vmul.f32 %v2493_v6, %v3720_v18  ;;  %v2875_v9 = vmul.f32 %v2564_v7, %v3722_v23  ;;  %v2495_v10 = vpop.f32.mrb[27].mxu0  ;;  %v2566_v11 = vpop.f32.mrb[27].mxu1 }
 0x24e   :  { %v2874_v12 = vmul.f32 %v2495_v10, %v3724_v42  ;;  %v2876_v13 = vmul.f32 %v2566_v11, %v3726_v19 }
 0x24f   :  { %2905 = vst [vmem:[#allocation5 + $0xa0] sm:$0xff] %v2873_v8  ;;  %2907 = vst [vmem:[#allocation5 + $0xb0] sm:$0xff] %v2875_v9 }
 0x250   :  { %2906 = vst [vmem:[#allocation5 + $0xa8] sm:$0xff] %v2874_v12  ;;  %2908 = vst [vmem:[#allocation5 + $0xb8] sm:$0xff] %v2876_v13 }
 0x25c   :  { %v2635_v14 = vpop.f32.mrb[28].mxu0  ;;  %v2706_v15 = vpop.f32.mrb[28].mxu1 }
 0x25d   :  { %v2877_v16 = vmul.f32 %v2635_v14, %v3728_v2  ;;  %v2879_v17 = vmul.f32 %v2706_v15, %v3730_v20  ;;  %v2637_v27 = vpop.f32.mrb[29].mxu0  ;;  %v2708_v18 = vpop.f32.mrb[29].mxu1 }
 0x25e   :  { %v2878_v23 = vmul.f32 %v2637_v27, %v3732_v21  ;;  %v2880_v28 = vmul.f32 %v2708_v18, %v3734_v22 }
 0x25f   :  { %2909 = vst [vmem:[#allocation5 + $0xc0] sm:$0xff] %v2877_v16  ;;  %2911 = vst [vmem:[#allocation5 + $0xd0] sm:$0xff] %v2879_v17 }
 0x260   :  { %2910 = vst [vmem:[#allocation5 + $0xc8] sm:$0xff] %v2878_v23  ;;  %2912 = vst [vmem:[#allocation5 + $0xd8] sm:$0xff] %v2880_v28 }
 0x26c   :  { %v2777_v42 = vpop.f32.mrb[30].mxu0  ;;  %v2848_v19 = vpop.f32.mrb[30].mxu1 }
 0x26d   :  { %v2881_v61 = vmul.f32 %v2777_v42, %v3736_v0  ;;  %v2883_v2 = vmul.f32 %v2848_v19, %v3738_v24  ;;  %v2779_v62 = vpop.f32.mrb[31].mxu0  ;;  %v2850_v20 = vpop.f32.mrb[31].mxu1 }
 0x26e   :  { %v2882_v29 = vmul.f32 %v2779_v62, %v3740_v25  ;;  %v2884_v21 = vmul.f32 %v2850_v20, %v3742_v26 }
 0x26f   :  { %2913 = vst [vmem:[#allocation5 + $0xe0] sm:$0xff] %v2881_v61  ;;  %2915 = vst [vmem:[#allocation5 + $0xf0] sm:$0xff] %v2883_v2 }
 0x270   :  { %2914 = vst [vmem:[#allocation5 + $0xe8] sm:$0xff] %v2882_v29  ;;  %2916 = vst [vmem:[#allocation5 + $0xf8] sm:$0xff] %v2884_v21 }
 0x271   :  { %3524 = shalt.err (!%p3521_p12)
}
 0x272   :  { %s3525_s29 = scalar_lea.hbm %s3782_s2, 4096 }
 0x273   :  { %p3526_p13 = scmp.ne.s32.totalorder %s3782_s2, %s3525_s29  ;;  %p3529_p0 = scmp.lt.u32.totalorder %s3525_s29, %s3782_s2 }
 0x275   :  { %p3531_p1 = pnand %p3529_p0, %p3526_p13 }
 0x277   :  { %3534 = shalt.err (!%p3531_p1)
}
 0x278   :  { %2926 = dma.vmem_to_hbm [thread:$0]  %s2924_s25, 4096, %s3782_s2, [#allocation4]  }
 0x279   :  { %3537 = dma.done.wait [#allocation4], 4096  }
 0x27a   :  { %3538 = vsyncadd [#allocation4], 4294963200 }
 0x27b   :  { %2930 = vsyncpa [#allocation3], 1 }
 0x27c   :  { %2931 = vsyncpa [#allocation4], 1 }

</bundles_post_ra>
